<compile_context>
chip_gen: v7x
topology: tpu7x:2x2x1
jax: 0.10.0
libtpu: 0.0.40
codegen_flags: <defaults>
</compile_context>

<pallas_src>
import jax
import jax.numpy as jnp
from jax import lax
from jax.experimental import pallas as pl
from jax.experimental.pallas import tpu as pltpu


def _seghead_kernel(xpad_ref, w3t_ref, bnb_ref, w1t_ref, b1_ref, r_ref, ct_ref,
                    out_ref):
    # xpad_ref: (1, Cin, H+2, W+2) zero-padded, channel-major input (one batch)
    # w3t_ref:  (Cmid, 9*Cin)      conv3x3 weight, tap-major, BN-scale folded, bf16
    # bnb_ref:  (Cmid, 1)          folded BatchNorm bias, f32
    # w1t_ref:  (Cout, Cmid)       1x1 conv weight, bf16
    # b1_ref:   (Cout, 1)          1x1 conv bias, f32
    # r_ref:    (OH, H)            row interp matrix (align_corners=True), bf16
    # ct_ref:   (W, OW)            column interp matrix (transposed), bf16
    # out_ref:  (1, Cout, OH, OW)  NCHW output block
    _, cin, hp, wp = xpad_ref.shape
    h, w = hp - 2, wp - 2
    cmid = w3t_ref.shape[0]
    cout = w1t_ref.shape[0]
    oh = r_ref.shape[0]
    ow = ct_ref.shape[1]

    # --- Fused im2col: one (9*Cin, H*W) tile from the 9 shifted VMEM slices
    # (channel-major keeps H*W on the lane axis -> lane-dense intermediates
    # even with Cin=4).  Single concat, single MXU call for the whole conv3x3.
    taps = []
    for k in range(9):
        dy, dx = k // 3, k % 3
        taps.append(xpad_ref[0, :, dy:dy + h, dx:dx + w].reshape(cin, h * w))
    col = jnp.concatenate(taps, axis=0).astype(jnp.bfloat16)      # (9*Cin, H*W)
    # TODO(synk): the 9 slice+reshape relayouts could be reduced further with
    # pltpu.roll-based dx shifts on a single loaded tile.

    # --- conv3x3 (BN scale already folded into w3t) as ONE matmul, f32 acc.
    y = jnp.dot(w3t_ref[...], col,
                preferred_element_type=jnp.float32)               # (Cmid, H*W)
    # BatchNorm bias + ReLU in f32 (v5e has no bf16 VALU path).
    y = jnp.maximum(y + bnb_ref[...], 0.0)
    # TODO(synk): Dropout(0.1) is the identity in eval mode; training-mode
    # stochastic masking is not implemented.

    # --- 1x1 conv + bias, one matmul.
    z = jnp.dot(w1t_ref[...], y.astype(jnp.bfloat16),
                preferred_element_type=jnp.float32) + b1_ref[...]  # (Cout, H*W)
    z3 = z.reshape(cout, h, w)

    # --- Separable bilinear upsample (align_corners=True):
    #   rows:    one Cout-batched dot_general -> (Cout, OH, W)
    #   columns: one fused 2-D matmul         -> (Cout*OH, OW)
    rb = jnp.broadcast_to(r_ref[...], (cout, oh, h))               # bf16, tiny
    t = jnp.einsum('coh,chw->cow', rb, z3.astype(jnp.bfloat16),
                   preferred_element_type=jnp.float32)             # (Cout, OH, W)
    u = jnp.dot(t.reshape(cout * oh, w).astype(jnp.bfloat16), ct_ref[...],
                preferred_element_type=jnp.float32)                # (Cout*OH, OW)

    # --- Single NCHW store (lane axis = OW; lane-dense once OW >= 128).
    out_ref[0] = u.reshape(cout, oh, ow).astype(out_ref.dtype)


def _interp_matrix(out_size, in_size, dtype=jnp.float32):
    """Bilinear (align_corners=True) 1-D interpolation matrix (out, in)."""
    if out_size == 1:
        src = jnp.zeros((1,), jnp.float32)
    else:
        src = jnp.arange(out_size, dtype=jnp.float32) * (
            (in_size - 1) / (out_size - 1))
    lo = jnp.clip(jnp.floor(src).astype(jnp.int32), 0, in_size - 1)
    hi = jnp.minimum(lo + 1, in_size - 1)
    frac = src - lo.astype(jnp.float32)
    m = jnp.zeros((out_size, in_size), jnp.float32)
    rows = jnp.arange(out_size)
    m = m.at[rows, lo].add(1.0 - frac)
    m = m.at[rows, hi].add(frac)
    return m.astype(dtype)


def seghead_forward(x_nchw, params, size):
    n, cin, h, w = x_nchw.shape
    oh, ow = size
    w3, bn_scale, bn_bias, w1, b1 = params
    cmid = w3.shape[-1]
    cout = w1.shape[-1]

    # Glue: keep channel-major (NCHW), zero-pad spatially by 1 for the 3x3 conv.
    xpad = jnp.pad(x_nchw, ((0, 0), (0, 0), (1, 1), (1, 1)))

    # Fold BN scale into the conv3x3 weight; tap-major (Cmid, 9*Cin), bf16.
    w3f = (w3 * bn_scale[0]).reshape(9 * cin, cmid)       # HWIO -> (9*Cin, Cmid)
    w3t = w3f.T.astype(jnp.bfloat16)                      # (Cmid, 9*Cin)
    bnb = bn_bias.reshape(cmid, 1)                        # (Cmid, 1), f32
    w1t = w1.T.astype(jnp.bfloat16)                       # (Cout, Cmid)
    b1c = b1.reshape(cout, 1)                             # (Cout, 1), f32

    # Separable bilinear (align_corners=True) interpolation matrices, bf16.
    r = _interp_matrix(oh, h, jnp.bfloat16)               # (OH, H)
    ct = _interp_matrix(ow, w, jnp.float32).T.astype(jnp.bfloat16)   # (W, OW)

    flops = n * 2 * (h * w * 9 * cin * cmid + h * w * cmid * cout
                     + cout * oh * h * w + cout * oh * w * ow)
    bytes_accessed = (4 * n * cin * (h + 2) * (w + 2)
                      + 2 * (9 * cin * cmid + cmid * cout + oh * h + w * ow)
                      + 4 * (cmid + cout)
                      + 4 * n * cout * oh * ow)

    out = pl.pallas_call(
        _seghead_kernel,
        out_shape=jax.ShapeDtypeStruct((n, cout, oh, ow), x_nchw.dtype),
        grid_spec=pltpu.PrefetchScalarGridSpec(
            num_scalar_prefetch=0,
            grid=(n,),
            in_specs=[
                pl.BlockSpec((1, cin, h + 2, w + 2), lambda i: (i, 0, 0, 0)),
                pl.BlockSpec((cmid, 9 * cin), lambda i: (0, 0)),
                pl.BlockSpec((cmid, 1), lambda i: (0, 0)),
                pl.BlockSpec((cout, cmid), lambda i: (0, 0)),
                pl.BlockSpec((cout, 1), lambda i: (0, 0)),
                pl.BlockSpec((oh, h), lambda i: (0, 0)),
                pl.BlockSpec((w, ow), lambda i: (0, 0)),
            ],
            out_specs=pl.BlockSpec((1, cout, oh, ow), lambda i: (i, 0, 0, 0)),
        ),
        compiler_params=pltpu.CompilerParams(
            dimension_semantics=("parallel",),
            vmem_limit_bytes=32 * 1024 * 1024),
        cost_estimate=pl.CostEstimate(flops=int(flops), transcendentals=0,
                                      bytes_accessed=int(bytes_accessed)),
    )(xpad, w3t, bnb, w1t, b1c, r, ct)
    return out                                            # already NCHW


def seghead_reference(x_nchw, params, size):
    """Pure-JAX f32 reference (original un-folded math) for the sanity check."""
    w3, bn_scale, bn_bias, w1, b1 = params
    oh, ow = size
    h, w = x_nchw.shape[2], x_nchw.shape[3]
    x = jnp.transpose(x_nchw, (0, 2, 3, 1))
    y = lax.conv_general_dilated(
        x, w3, window_strides=(1, 1), padding=((1, 1), (1, 1)),
        dimension_numbers=('NHWC', 'HWIO', 'NHWC'))
    y = y * bn_scale[0] + bn_bias[0]
    y = jnp.maximum(y, 0.0)
    z = jnp.einsum('nhwc,cd->nhwd', y, w1) + b1[0]
    r = _interp_matrix(oh, h)
    c = _interp_matrix(ow, w)
    up = jnp.einsum('ph,nhwc->npwc', r, z)
    up = jnp.einsum('qw,npwc->npqc', c, up)
    return jnp.transpose(up, (0, 3, 1, 2))


if __name__ == "__main__":
    N, CIN, CMID, COUT = 2, 4, 8, 6
    H = W = 16
    OUT_SIZE = (32, 32)

    key = jax.random.PRNGKey(0)
    k_x, k_w3, k_g, k_b, k_m, k_v, k_w1, k_b1 = jax.random.split(key, 8)

    x = jax.random.normal(k_x, (N, CIN, H, W), jnp.float32)   # PyTorch NCHW

    # Deterministic synthetic parameters (shapes match SegHead(CIN, CMID, COUT)).
    w3 = 0.1 * jax.random.normal(k_w3, (3, 3, CIN, CMID), jnp.float32)  # HWIO
    gamma = 1.0 + 0.1 * jax.random.normal(k_g, (CMID,), jnp.float32)
    beta = 0.1 * jax.random.normal(k_b, (CMID,), jnp.float32)
    run_mean = 0.1 * jax.random.normal(k_m, (CMID,), jnp.float32)
    run_var = jax.random.uniform(k_v, (CMID,), jnp.float32, 0.5, 1.5)
    eps = 1e-5
    bn_scale = (gamma / jnp.sqrt(run_var + eps)).reshape(1, CMID)
    bn_bias = (beta - run_mean * bn_scale[0]).reshape(1, CMID)
    w1 = 0.1 * jax.random.normal(k_w1, (CMID, COUT), jnp.float32)
    b1 = 0.1 * jax.random.normal(k_b1, (1, COUT), jnp.float32)
    params = (w3, bn_scale, bn_bias, w1, b1)

    out = seghead_forward(x, params, OUT_SIZE)
    out = jax.block_until_ready(out)
    assert out.shape == (N, COUT, OUT_SIZE[0], OUT_SIZE[1]), out.shape

    ref = seghead_reference(x, params, OUT_SIZE)
    max_err = float(jnp.max(jnp.abs(out - ref)))
    assert jnp.allclose(out, ref, rtol=1e-2, atol=1e-2), max_err

    print("KERNEL_OK")
</pallas_src>

<mosaic_0001>
module attributes {stable_mosaic.version = 11 : i64} {
  func.func @_seghead_kernel(%arg0: i32, %arg1: memref<1x4x18x18xf32, #tpu.memory_space<vmem>>, %arg2: memref<8x36xbf16, #tpu.memory_space<vmem>>, %arg3: memref<8x1xf32, #tpu.memory_space<vmem>>, %arg4: memref<6x8xbf16, #tpu.memory_space<vmem>>, %arg5: memref<6x1xf32, #tpu.memory_space<vmem>>, %arg6: memref<32x16xbf16, #tpu.memory_space<vmem>>, %arg7: memref<16x32xbf16, #tpu.memory_space<vmem>>, %arg8: memref<1x6x32x32xf32, #tpu.memory_space<vmem>>) attributes {dimension_semantics = [#tpu.dimension_semantics<parallel>], iteration_bounds = array<i64: 2>, scalar_prefetch = 0 : i64, scratch_operands = 0 : i64, tpu.core_type = #tpu.core_type<tc>, window_params = [{transform_indices = @transform_0, window_bounds = array<i64: 1, 4, 18, 18>}, {pipeline_mode = #tpu.pipeline_mode<synchronous>, transform_indices = @transform_1, window_bounds = array<i64: 8, 36>}, {pipeline_mode = #tpu.pipeline_mode<synchronous>, transform_indices = @transform_2, window_bounds = array<i64: 8, 1>}, {pipeline_mode = #tpu.pipeline_mode<synchronous>, transform_indices = @transform_3, window_bounds = array<i64: 6, 8>}, {pipeline_mode = #tpu.pipeline_mode<synchronous>, transform_indices = @transform_4, window_bounds = array<i64: 6, 1>}, {pipeline_mode = #tpu.pipeline_mode<synchronous>, transform_indices = @transform_5, window_bounds = array<i64: 32, 16>}, {pipeline_mode = #tpu.pipeline_mode<synchronous>, transform_indices = @transform_6, window_bounds = array<i64: 16, 32>}, {transform_indices = @transform_7, window_bounds = array<i64: 1, 6, 32, 32>}]} {
    %c0 = arith.constant 0 : index
    %c0_0 = arith.constant 0 : index
    %c0_1 = arith.constant 0 : index
    %c0_2 = arith.constant 0 : index
    %0 = vector.load %arg1[%c0, %c0_0, %c0_1, %c0_2] : memref<1x4x18x18xf32, #tpu.memory_space<vmem>>, vector<1x4x16x16xf32>
    %1 = vector.shape_cast %0 : vector<1x4x16x16xf32> to vector<4x16x16xf32>
    %2 = vector.shape_cast %1 : vector<4x16x16xf32> to vector<4x256xf32>
    %c0_3 = arith.constant 0 : index
    %c0_4 = arith.constant 0 : index
    %c0_5 = arith.constant 0 : index
    %c1 = arith.constant 1 : index
    %3 = vector.load %arg1[%c0_3, %c0_4, %c0_5, %c1] : memref<1x4x18x18xf32, #tpu.memory_space<vmem>>, vector<1x4x16x16xf32>
    %4 = vector.shape_cast %3 : vector<1x4x16x16xf32> to vector<4x16x16xf32>
    %5 = vector.shape_cast %4 : vector<4x16x16xf32> to vector<4x256xf32>
    %c0_6 = arith.constant 0 : index
    %c0_7 = arith.constant 0 : index
    %c0_8 = arith.constant 0 : index
    %c2 = arith.constant 2 : index
    %6 = vector.load %arg1[%c0_6, %c0_7, %c0_8, %c2] : memref<1x4x18x18xf32, #tpu.memory_space<vmem>>, vector<1x4x16x16xf32>
    %7 = vector.shape_cast %6 : vector<1x4x16x16xf32> to vector<4x16x16xf32>
    %8 = vector.shape_cast %7 : vector<4x16x16xf32> to vector<4x256xf32>
    %c0_9 = arith.constant 0 : index
    %c0_10 = arith.constant 0 : index
    %c1_11 = arith.constant 1 : index
    %c0_12 = arith.constant 0 : index
    %9 = vector.load %arg1[%c0_9, %c0_10, %c1_11, %c0_12] : memref<1x4x18x18xf32, #tpu.memory_space<vmem>>, vector<1x4x16x16xf32>
    %10 = vector.shape_cast %9 : vector<1x4x16x16xf32> to vector<4x16x16xf32>
    %11 = vector.shape_cast %10 : vector<4x16x16xf32> to vector<4x256xf32>
    %c0_13 = arith.constant 0 : index
    %c0_14 = arith.constant 0 : index
    %c1_15 = arith.constant 1 : index
    %c1_16 = arith.constant 1 : index
    %12 = vector.load %arg1[%c0_13, %c0_14, %c1_15, %c1_16] : memref<1x4x18x18xf32, #tpu.memory_space<vmem>>, vector<1x4x16x16xf32>
    %13 = vector.shape_cast %12 : vector<1x4x16x16xf32> to vector<4x16x16xf32>
    %14 = vector.shape_cast %13 : vector<4x16x16xf32> to vector<4x256xf32>
    %c0_17 = arith.constant 0 : index
    %c0_18 = arith.constant 0 : index
    %c1_19 = arith.constant 1 : index
    %c2_20 = arith.constant 2 : index
    %15 = vector.load %arg1[%c0_17, %c0_18, %c1_19, %c2_20] : memref<1x4x18x18xf32, #tpu.memory_space<vmem>>, vector<1x4x16x16xf32>
    %16 = vector.shape_cast %15 : vector<1x4x16x16xf32> to vector<4x16x16xf32>
    %17 = vector.shape_cast %16 : vector<4x16x16xf32> to vector<4x256xf32>
    %c0_21 = arith.constant 0 : index
    %c0_22 = arith.constant 0 : index
    %c2_23 = arith.constant 2 : index
    %c0_24 = arith.constant 0 : index
    %18 = vector.load %arg1[%c0_21, %c0_22, %c2_23, %c0_24] : memref<1x4x18x18xf32, #tpu.memory_space<vmem>>, vector<1x4x16x16xf32>
    %19 = vector.shape_cast %18 : vector<1x4x16x16xf32> to vector<4x16x16xf32>
    %20 = vector.shape_cast %19 : vector<4x16x16xf32> to vector<4x256xf32>
    %c0_25 = arith.constant 0 : index
    %c0_26 = arith.constant 0 : index
    %c2_27 = arith.constant 2 : index
    %c1_28 = arith.constant 1 : index
    %21 = vector.load %arg1[%c0_25, %c0_26, %c2_27, %c1_28] : memref<1x4x18x18xf32, #tpu.memory_space<vmem>>, vector<1x4x16x16xf32>
    %22 = vector.shape_cast %21 : vector<1x4x16x16xf32> to vector<4x16x16xf32>
    %23 = vector.shape_cast %22 : vector<4x16x16xf32> to vector<4x256xf32>
    %c0_29 = arith.constant 0 : index
    %c0_30 = arith.constant 0 : index
    %c2_31 = arith.constant 2 : index
    %c2_32 = arith.constant 2 : index
    %24 = vector.load %arg1[%c0_29, %c0_30, %c2_31, %c2_32] : memref<1x4x18x18xf32, #tpu.memory_space<vmem>>, vector<1x4x16x16xf32>
    %25 = vector.shape_cast %24 : vector<1x4x16x16xf32> to vector<4x16x16xf32>
    %26 = vector.shape_cast %25 : vector<4x16x16xf32> to vector<4x256xf32>
    %27 = tpu.concatenate %2, %5, %8, %11, %14, %17, %20, %23, %26 in 0 : vector<4x256xf32>, vector<4x256xf32>, vector<4x256xf32>, vector<4x256xf32>, vector<4x256xf32>, vector<4x256xf32>, vector<4x256xf32>, vector<4x256xf32>, vector<4x256xf32> -> vector<36x256xf32>
    %28 = arith.truncf %27 : vector<36x256xf32> to vector<36x256xbf16>
    %c0_33 = arith.constant 0 : index
    %c0_34 = arith.constant 0 : index
    %29 = vector.load %arg2[%c0_33, %c0_34] : memref<8x36xbf16, #tpu.memory_space<vmem>>, vector<8x36xbf16>
    %cst = arith.constant dense<0.000000e+00> : vector<8x256xf32>
    %30 = tpu.matmul %29, %28, %cst {dimension_numbers = #tpu.dot_dimension_numbers<[1], [0], [0], [1], [0, 0, 1, 1], [], []>} : vector<8x36xbf16>, vector<36x256xbf16>, vector<8x256xf32> -> vector<8x256xf32>
    %c0_35 = arith.constant 0 : index
    %c0_36 = arith.constant 0 : index
    %31 = vector.load %arg3[%c0_35, %c0_36] : memref<8x1xf32, #tpu.memory_space<vmem>>, vector<8x1xf32>
    %32 = vector.broadcast %31 : vector<8x1xf32> to vector<8x256xf32>
    %33 = arith.addf %30, %32 : vector<8x256xf32>
    %cst_37 = arith.constant 0.000000e+00 : f32
    %34 = vector.broadcast %cst_37 : f32 to vector<8x256xf32>
    %35 = arith.maximumf %33, %34 : vector<8x256xf32>
    %c0_38 = arith.constant 0 : index
    %c0_39 = arith.constant 0 : index
    %36 = vector.load %arg4[%c0_38, %c0_39] : memref<6x8xbf16, #tpu.memory_space<vmem>>, vector<6x8xbf16>
    %37 = arith.truncf %35 : vector<8x256xf32> to vector<8x256xbf16>
    %cst_40 = arith.constant dense<0.000000e+00> : vector<6x256xf32>
    %38 = tpu.matmul %36, %37, %cst_40 {dimension_numbers = #tpu.dot_dimension_numbers<[1], [0], [0], [1], [0, 0, 1, 1], [], []>} : vector<6x8xbf16>, vector<8x256xbf16>, vector<6x256xf32> -> vector<6x256xf32>
    %c0_41 = arith.constant 0 : index
    %c0_42 = arith.constant 0 : index
    %39 = vector.load %arg5[%c0_41, %c0_42] : memref<6x1xf32, #tpu.memory_space<vmem>>, vector<6x1xf32>
    %40 = vector.broadcast %39 : vector<6x1xf32> to vector<6x256xf32>
    %41 = arith.addf %38, %40 : vector<6x256xf32>
    %42 = vector.shape_cast %41 : vector<6x256xf32> to vector<6x16x16xf32>
    %c0_43 = arith.constant 0 : index
    %c0_44 = arith.constant 0 : index
    %43 = vector.load %arg6[%c0_43, %c0_44] : memref<32x16xbf16, #tpu.memory_space<vmem>>, vector<32x16xbf16>
    %44 = vector.shape_cast %43 : vector<32x16xbf16> to vector<1x32x16xbf16>
    %45 = vector.broadcast %44 : vector<1x32x16xbf16> to vector<6x32x16xbf16>
    %46 = arith.truncf %42 : vector<6x16x16xf32> to vector<6x16x16xbf16>
    "tpu.trace_start"() <{level = 10 : i32, message = "coh,chw->cow"}> : () -> ()
    %cst_45 = arith.constant dense<0.000000e+00> : vector<6x32x16xf32>
    %47 = tpu.matmul %45, %46, %cst_45 {dimension_numbers = #tpu.dot_dimension_numbers<[2], [1], [1], [2], [0, 0, 0, 1, 1, 2], [0], [0]>} : vector<6x32x16xbf16>, vector<6x16x16xbf16>, vector<6x32x16xf32> -> vector<6x32x16xf32>
    "tpu.trace_stop"() : () -> ()
    %48 = vector.shape_cast %47 : vector<6x32x16xf32> to vector<192x16xf32>
    %49 = arith.truncf %48 : vector<192x16xf32> to vector<192x16xbf16>
    %c0_46 = arith.constant 0 : index
    %c0_47 = arith.constant 0 : index
    %50 = vector.load %arg7[%c0_46, %c0_47] : memref<16x32xbf16, #tpu.memory_space<vmem>>, vector<16x32xbf16>
    %cst_48 = arith.constant dense<0.000000e+00> : vector<192x32xf32>
    %51 = tpu.matmul %49, %50, %cst_48 {dimension_numbers = #tpu.dot_dimension_numbers<[1], [0], [0], [1], [0, 0, 1, 1], [], []>} : vector<192x16xbf16>, vector<16x32xbf16>, vector<192x32xf32> -> vector<192x32xf32>
    %52 = vector.shape_cast %51 : vector<192x32xf32> to vector<6x32x32xf32>
    %c0_49 = arith.constant 0 : index
    %c0_50 = arith.constant 0 : index
    %c0_51 = arith.constant 0 : index
    %c0_52 = arith.constant 0 : index
    %53 = vector.load %arg8[%c0_49, %c0_50, %c0_51, %c0_52] : memref<1x6x32x32xf32, #tpu.memory_space<vmem>>, vector<1x6x32x32xf32>
    %54 = vector.shape_cast %53 : vector<1x6x32x32xf32> to vector<6x32x32xf32>
    %55 = vector.shape_cast %52 : vector<6x32x32xf32> to vector<1x6x32x32xf32>
    tpu.vector_store %arg8[%c0_49, %c0_50, %c0_51, %c0_52], %55 {strides = array<i32>} : memref<1x6x32x32xf32, #tpu.memory_space<vmem>>, vector<1x6x32x32xf32>,
    return
  }
  func.func @transform_0(%arg0: i32) -> (i32, i32, i32, i32) {
    %c0_i32 = arith.constant 0 : i32
    %c0_i32_0 = arith.constant 0 : i32
    %c0_i32_1 = arith.constant 0 : i32
    %c0_i32_2 = arith.constant 0 : i32
    return %arg0, %c0_i32, %c0_i32_0, %c0_i32_1 : i32, i32, i32, i32
  }
  func.func @transform_1(%arg0: i32) -> (i32, i32) {
    %c0_i32 = arith.constant 0 : i32
    %c0_i32_0 = arith.constant 0 : i32
    %c0_i32_1 = arith.constant 0 : i32
    return %c0_i32, %c0_i32_0 : i32, i32
  }
  func.func @transform_2(%arg0: i32) -> (i32, i32) {
    %c0_i32 = arith.constant 0 : i32
    %c0_i32_0 = arith.constant 0 : i32
    %c0_i32_1 = arith.constant 0 : i32
    return %c0_i32, %c0_i32_0 : i32, i32
  }
  func.func @transform_3(%arg0: i32) -> (i32, i32) {
    %c0_i32 = arith.constant 0 : i32
    %c0_i32_0 = arith.constant 0 : i32
    %c0_i32_1 = arith.constant 0 : i32
    return %c0_i32, %c0_i32_0 : i32, i32
  }
  func.func @transform_4(%arg0: i32) -> (i32, i32) {
    %c0_i32 = arith.constant 0 : i32
    %c0_i32_0 = arith.constant 0 : i32
    %c0_i32_1 = arith.constant 0 : i32
    return %c0_i32, %c0_i32_0 : i32, i32
  }
  func.func @transform_5(%arg0: i32) -> (i32, i32) {
    %c0_i32 = arith.constant 0 : i32
    %c0_i32_0 = arith.constant 0 : i32
    %c0_i32_1 = arith.constant 0 : i32
    return %c0_i32, %c0_i32_0 : i32, i32
  }
  func.func @transform_6(%arg0: i32) -> (i32, i32) {
    %c0_i32 = arith.constant 0 : i32
    %c0_i32_0 = arith.constant 0 : i32
    %c0_i32_1 = arith.constant 0 : i32
    return %c0_i32, %c0_i32_0 : i32, i32
  }
  func.func @transform_7(%arg0: i32) -> (i32, i32, i32, i32) {
    %c0_i32 = arith.constant 0 : i32
    %c0_i32_0 = arith.constant 0 : i32
    %c0_i32_1 = arith.constant 0 : i32
    %c0_i32_2 = arith.constant 0 : i32
    return %arg0, %c0_i32, %c0_i32_0, %c0_i32_1 : i32, i32, i32, i32
  }
}

</mosaic_0001>

<bundles_post_ra>
// kernel: tpu_custom_call.1
= control target key start
LH: loop header
LB: loop body
LE: loop exit
PB: predicated region body
PF: predicated region fallthrough
CT: control target
= control target key end

     0   :  { %12 = vsyncpa [#allocation3], 0  ;;  %s5646_s0 = inlined_call_operand.vmem [shape: f32[2,4,18,18], index: 0, kind: input, shape index: {}]   ;;  %s5647_s1 = inlined_call_operand.vmem [shape: bf16[8,36], index: 1, kind: input, shape index: {}]   ;;  %s5648_s2 = inlined_call_operand.vmem [shape: f32[8,1], index: 2, kind: input, shape index: {}]   ;;  %s5649_s3 = inlined_call_operand.vmem [shape: bf16[6,8], index: 3, kind: input, shape index: {}]   ;;  %s5650_s4 = inlined_call_operand.vmem [shape: f32[6,1], index: 4, kind: input, shape index: {}]   ;;  %s5651_s5 = inlined_call_operand.vmem [shape: bf16[32,16], index: 5, kind: input, shape index: {}]   ;;  %s5652_s6 = inlined_call_operand.vmem [shape: bf16[16,32], index: 6, kind: input, shape index: {}]   ;;  %s5653_s7 = inlined_call_operand.hbm [shape: f32[2,6,32,32], index: 7, kind: output, shape index: {}]  }
   0x1   :  { %14 = vsyncpa [#allocation3 + $0x1], 0  ;;  %s4031_s24 = smov 0   ;;  %s4033_s25 = smov 0  }
   0x2   :  { %s4035_s26 = smov 0   ;;  %s4037_s27 = smov 0  }
   0x3 LB: > { %s4052_s28 = sadd.s32 4294967295, %s3973_s27   ;;  %s3376_s29 = sadd.s32 4294967294, %s3973_s27   ;;  %s3973_s27 = sphi %s4037_s27, %s5733_s27   ;;  %s3969_s26 = sphi %s4035_s26, %s5732_s26   ;;  %s3965_s25 = sphi %s4033_s25, %s5731_s25   ;;  %s3961_s24 = sphi %s4031_s24, %s5730_s24  }
   0x4   : > { %s4056_s30 = sadd.s32 1, %s3973_s27   ;;  %s179_s8 = sadd.s32 1, %s3969_s26 }
   0x5   : > { %s176_s9 = ssub.s32 %s3973_s27, %s4056_s30  ;;  %p189_p0 = scmp.ne.s32.totalorder %s3969_s26, %s3965_s25 }
   0x6   : > { %p177_p1 = scmp.eq.s32.totalorder %s176_s9, 0  ;;  %p190_p2 = scmp.eq.s32.totalorder %s4052_s28, 1 }
   0x7   : > { %p195_p3 = scmp.ne.s32.totalorder %s3965_s25, %s3961_s24  ;;  %p196_p4 = scmp.eq.s32.totalorder %s3376_s29, 1 }
   0x8   : > { %s4067_s10 = scalar_select %p177_p1, %s3969_s26, %s179_s8  }
   0x9   : > { %p4069_p5 = por %p190_p2, %p189_p0  ;;  %p4073_p6 = por %p196_p4, %p195_p3 }
   0xa   : > { %p3379_p7 = scmp.ge.s32.totalorder %s3973_s27, 1  ;;  %p240_p8 = scmp.lt.s32.totalorder %s3973_s27, 3 }
   0xc   : > { %p241_p9 = pnand %p3379_p7, %p240_p8 }
   0xe   : > { %244 = sbr.rel (%p241_p9) target bundleno = 1501 (0x5dd), region = 48 }
  0x15   : > { %p272_p10 = scmp.lt.s32.totalorder %s4052_s28, 1  ;;  %v3975_v0 = vmov 1983009808   ;;  %v291_v2 = vlaneseq  ;;  %s3976_s18 = smov 127   ;;  %vm478_vm0 = vcmask 130048   ;;  %vm480_vm1 = vcmask 261120  }
  0x16   : > { %v289_v1 = vunpack.c.l.s4 %v3975_v0  ;;  %s3977_s19 = smov 126   ;;  %s3979_s20 = smov 32   ;;  %vm482_vm2 = vcmask 392192   ;;  %vm484_vm3 = vcmask 523264   ;;  %vm486_vm4 = vcmask 654336  }
  0x17   : > { %s273_s13 = scalar_select %p272_p10, %s4052_s28, 1  ;;  %v4112_v14 = vshrl.u32 %v291_v2, 7  ;;  %vm488_vm5 = vcmask 785408   ;;  %vm490_vm6 = vcmask 916480   ;;  %vm2355_vm7 = vcmask 1043456  }
  0x18   : > { %v290_v13 = vunpack.c.0.s8 %v289_v1  ;;  %s3981_s21 = smov 64   ;;  %s3982_s22 = smov 16   ;;  %vm2381_vm8 = vcmask 1041408   ;;  %vm2377_vm9 = vcmask 293888   ;;  %vm2440_vm10 = vcmask 64512  }
  0x19   : > { %s3511_s14 = smul.u32 96, %s273_s13  ;;  %s3983_s23 = smov 48  }
  0x1a   : > { %v4150_v28 = vsub.s32 %v290_v13, %v4112_v14  ;;  %s3984_s29 = smov 96   ;;  %s3985_s8 = smov 80  }
  0x1b   : > { %s4084_s17 = scalar_lea.vmem %s5646_s0, %s3511_s14  ;;  %s3986_s9 = smov 112  }
  0x1c   : > { %v4087_v3 = vld [vmem:[%s4084_s17 + $0x38] sm:$0xff]  ;;  %v4090_v4 = vld [vmem:[%s4084_s17 + $0x8] sm:$0xff]  ;;  %v4101_v7 = vld [vmem:[%s4084_s17 + $0x50] sm:$0xff]  ;;  %s3512_s16 = smul.u32 3072, %s4052_s28  ;;  %s3988_s14 = smov [#allocation2]  }
  0x1d   : > { %517 = vrot.lane.b32.xlu1 %v4087_v3, %s3976_s18  ;;  %509 = vrot.lane.b32.xlu0 %v4090_v4, %s3976_s18  ;;  %v354_v5 = vcombine.low %v4090_v4, %v4087_v3  ;;  %v355_v6 = vcombine.high %v4090_v4, %v4087_v3  ;;  %v281_v8 = vld [vmem:[%s4084_s17 + $0x20] sm:$0xff]  ;;  %v4107_v11 = vld [vmem:[%s4084_s17 + $0x18] sm:$0xff] }
  0x1e   : > { %v370_v9 = vcombine.low %v281_v8, %v4101_v7  ;;  %v371_v10 = vcombine.high %v281_v8, %v4101_v7  ;;  %v4110_v12 = vld [vmem:[%s4084_s17 + $0x48] sm:$0xff]  ;;  %v4115_v15 = vld [vmem:[%s4084_s17] sm:$0xff]  ;;  %v4122_v18 = vld [vmem:[%s4084_s17 + $0x30] sm:$0xff]  ;;  %s5597_s13 = scalar_lea.hbm %s5653_s7, %s3512_s16 }
  0x1f   : > { %v302_v16 = vcombine.low %v4107_v11, %v4110_v12  ;;  %v303_v17 = vcombine.high %v4107_v11, %v4110_v12  ;;  %v286_v19 = vcombine.low %v4115_v15, %v4122_v18  ;;  %v287_v20 = vcombine.high %v4115_v15, %v4122_v18  ;;  %v4129_v21 = vld [vmem:[%s4084_s17 + $0x21] sm:$0xff]  ;;  %v4132_v22 = vld [vmem:[%s4084_s17 + $0x51] sm:$0xff]  ;;  %v4138_v23 = vld [vmem:[%s4084_s17 + $0x9] sm:$0xff] }
  0x20   : > { %v1059_v24 = vcombine.low %v4129_v21, %v4132_v22  ;;  %v4143_v25 = vld [vmem:[%s4084_s17 + $0x39] sm:$0xff]  ;;  %v1060_v26 = vcombine.high %v4129_v21, %v4132_v22  ;;  %v4155_v30 = vrot.slane %v354_v5, %v4150_v28  ;;  %v4158_v31 = vrot.slane %v370_v9, %v4150_v28  ;;  %v4168_v33 = vld [vmem:[%s4084_s17 + $0x49] sm:$0xff]  ;;  %v4177_v36 = vld [vmem:[%s4084_s17 + $0x1] sm:$0xff] }
  0x21   : > { %521 = vrot.lane.b32.xlu1 %v4101_v7, %s3976_s18  ;;  %513 = vrot.lane.b32.xlu0 %v281_v8, %s3976_s18  ;;  %v1043_v27 = vcombine.low %v4138_v23, %v4143_v25  ;;  %v1044_v29 = vcombine.high %v4138_v23, %v4143_v25  ;;  %v4165_v32 = vld [vmem:[%s4084_s17 + $0x19] sm:$0xff]  ;;  %v4184_v39 = vld [vmem:[%s4084_s17 + $0x31] sm:$0xff]  ;;  %v4197_v44 = vrot.slane %v355_v6, %v4150_v28 }
  0x22   : > { %v4171_v34 = vrot.slane %v1059_v24, %v4150_v28  ;;  %v991_v37 = vcombine.low %v4165_v32, %v4168_v33  ;;  %v992_v38 = vcombine.high %v4165_v32, %v4168_v33  ;;  %v4187_v40 = vrot.slane %v1060_v26, %v4150_v28  ;;  %v4286_v6 = vld [vmem:[%s4084_s17 + $0x22] sm:$0xff]  ;;  %v4299_v9 = vld [vmem:[%s4084_s17 + $0x3a] sm:$0xff]  ;;  %v4327_v13 = vld [vmem:[%s4084_s17 + $0x32] sm:$0xff] }
  0x23   : > { %v4174_v35 = vrot.slane %v1043_v27, %v4150_v28  ;;  %v4190_v41 = vrot.slane %v1044_v29, %v4150_v28  ;;  %v975_v42 = vcombine.low %v4177_v36, %v4184_v39  ;;  %v976_v43 = vcombine.high %v4177_v36, %v4184_v39 }
  0x24   : > { %v4200_v45 = vrot.slane %v371_v10, %v4150_v28  ;;  %v4203_v46 = vrot.slane %v991_v37, %v4150_v28  ;;  %v4206_v47 = vrot.slane %v992_v38, %v4150_v28  ;;  %v387_v52 = vcombine.high %v4155_v30, %v4158_v31  ;;  %v4314_v10 = vld [vmem:[%s4084_s17 + $0x1a] sm:$0xff] }
  0x25   : > { %511 = vrot.lane.b32.xlu1 %v4107_v11, %s3976_s18  ;;  %507 = vrot.lane.b32.xlu0 %v4115_v15, %s3976_s18  ;;  %v4213_v48 = vrot.slane %v975_v42, %v4150_v28  ;;  %v4216_v49 = vrot.slane %v976_v43, %v4150_v28  ;;  %v1076_v50 = vcombine.high %v4174_v35, %v4171_v34 }
  0x26   : > { %5679 = vst [vmem:[#allocation5_spill] sm:$0xff] %v4200_v45  ;;  %v1091_v53 = vcombine.low %v4190_v41, %v4187_v40  ;;  %v386_v55 = vcombine.low %v4155_v30, %v4158_v31  ;;  %v4235_v58 = vrot.slane %v302_v16, %v4150_v28  ;;  %v4238_v59 = vrot.slane %v286_v19, %v4150_v28 }
  0x27   : > { %v1008_v51 = vcombine.high %v4213_v48, %v4203_v46  ;;  %v1007_v54 = vcombine.low %v4213_v48, %v4203_v46  ;;  %v1023_v56 = vcombine.low %v4216_v49, %v4206_v47  ;;  %v4244_v60 = vrot.slane %v303_v17, %v4150_v28  ;;  %5680 = vst [vmem:[#allocation6_spill] sm:$0xff] %v4314_v10 }
  0x28   : > { %v4247_v61 = vrot.slane %v287_v20, %v4150_v28  ;;  %v319_v0 = vcombine.high %v4238_v59, %v4235_v58 }
  0x29   : > { %519 = vrot.lane.b32.xlu1 %v4110_v12, %s3976_s18  ;;  %515 = vrot.lane.b32.xlu0 %v4122_v18, %s3976_s18 }
  0x2d   : > { %743 = vrot.lane.b32.xlu1 %v281_v8, %s3977_s19  ;;  %739 = vrot.lane.b32.xlu0 %v4090_v4, %s3977_s19  ;;  %v4296_v8 = vld [vmem:[%s4084_s17 + $0x52] sm:$0xff] }
  0x31   : > { %751 = vrot.lane.b32.xlu1 %v4101_v7, %s3977_s19  ;;  %747 = vrot.lane.b32.xlu0 %v4087_v3, %s3977_s19  ;;  %v4289_v7 = vld [vmem:[%s4084_s17 + $0xa] sm:$0xff] }
  0x35   : > { %741 = vrot.lane.b32.xlu1 %v4107_v11, %s3977_s19  ;;  %737 = vrot.lane.b32.xlu0 %v4115_v15, %s3977_s19  ;;  %v4317_v11 = vld [vmem:[%s4084_s17 + $0x2] sm:$0xff]  ;;  %v3978_v15 = vmov 1934713408  }
  0x36   : > { %v321_v16 = vunpack.c.l.s4 %v3978_v15 }
  0x38   : > { %v322_v19 = vunpack.c.0.s8 %v321_v16 }
  0x39   : > { %749 = vrot.lane.b32.xlu1 %v4110_v12, %s3977_s19  ;;  %745 = vrot.lane.b32.xlu0 %v4122_v18, %s3977_s19  ;;  %v4324_v12 = vld [vmem:[%s4084_s17 + $0x4a] sm:$0xff] }
  0x3a   : > { %5681 = vst [vmem:[#allocation7_spill] sm:$0xff] %v4324_v12  ;;  %v4366_v24 = vsub.s32 %v322_v19, %v4112_v14 }
  0x3d   : > { %1425 = vrot.lane.b32.xlu1 %v4129_v21, %s3977_s19  ;;  %1421 = vrot.lane.b32.xlu0 %v4138_v23, %s3977_s19 }
  0x41   : > { %1433 = vrot.lane.b32.xlu1 %v4132_v22, %s3977_s19  ;;  %1429 = vrot.lane.b32.xlu0 %v4143_v25, %s3977_s19 }
  0x45   : > { %1877 = vrot.lane.b32.xlu1 %v4286_v6, %s3976_s18  ;;  %1873 = vrot.lane.b32.xlu0 %v4289_v7, %s3976_s18 }
  0x49   : > { %1885 = vrot.lane.b32.xlu1 %v4296_v8, %s3976_s18  ;;  %1881 = vrot.lane.b32.xlu0 %v4299_v9, %s3976_s18 }
  0x4d   : > { %1423 = vrot.lane.b32.xlu1 %v4165_v32, %s3977_s19  ;;  %1419 = vrot.lane.b32.xlu0 %v4177_v36, %s3977_s19 }
  0x51   : > { %1431 = vrot.lane.b32.xlu1 %v4168_v33, %s3977_s19  ;;  %1427 = vrot.lane.b32.xlu0 %v4184_v39, %s3977_s19 }
  0x55   : > { %1875 = vrot.lane.b32.xlu1 %v4314_v10, %s3976_s18  ;;  %1871 = vrot.lane.b32.xlu0 %v4317_v11, %s3976_s18 }
  0x59   : > { %1883 = vrot.lane.b32.xlu1 %v4324_v12, %s3976_s18  ;;  %1879 = vrot.lane.b32.xlu0 %v4327_v13, %s3976_s18 }
  0x5d   : > { %1195 = vrot.lane.b32.xlu1 %v4129_v21, %s3976_s18  ;;  %1191 = vrot.lane.b32.xlu0 %v4138_v23, %s3976_s18 }
  0x61   : > { %1203 = vrot.lane.b32.xlu1 %v4132_v22, %s3976_s18  ;;  %1199 = vrot.lane.b32.xlu0 %v4143_v25, %s3976_s18 }
  0x65   : > { %1193 = vrot.lane.b32.xlu1 %v4165_v32, %s3976_s18  ;;  %1189 = vrot.lane.b32.xlu0 %v4177_v36, %s3976_s18 }
  0x69   : > { %1201 = vrot.lane.b32.xlu1 %v4168_v33, %s3976_s18  ;;  %1197 = vrot.lane.b32.xlu0 %v4184_v39, %s3976_s18  ;;  %v4380_v33 = vrot.slane %v1076_v50, %v4366_v24 }
  0x6d   : > { %2103 = vrot.lane.b32.xlu1 %v4289_v7, %s3977_s19  ;;  %2101 = vrot.lane.b32.xlu0 %v4317_v11, %s3977_s19 }
  0x71   : > { %2107 = vrot.lane.b32.xlu1 %v4286_v6, %s3977_s19  ;;  %2105 = vrot.lane.b32.xlu0 %v4314_v10, %s3977_s19 }
  0x75   : > { %2111 = vrot.lane.b32.xlu1 %v4299_v9, %s3977_s19  ;;  %2109 = vrot.lane.b32.xlu0 %v4327_v13, %s3977_s19 }
  0x79   : > { %2115 = vrot.lane.b32.xlu1 %v4296_v8, %s3977_s19  ;;  %2113 = vrot.lane.b32.xlu0 %v4324_v12, %s3977_s19 }
  0x8f   : > { %v518_v17 = vpop.permute.xlu1 %517  ;;  %v510_v18 = vpop.permute.xlu0 %509 }
  0x90   : > { %v599_v20 = vcombine.low %v510_v18, %v518_v17 }
  0x92   : > { %v4369_v25 = vrot.slane %v599_v20, %v4150_v28 }
  0x93   : > { %v522_v21 = vpop.permute.xlu1 %521  ;;  %v514_v22 = vpop.permute.xlu0 %513 }
  0x94   : > { %v615_v23 = vcombine.low %v514_v22, %v522_v21  ;;  %v616_v16 = vcombine.high %v514_v22, %v522_v21 }
  0x96   : > { %v4372_v26 = vrot.slane %v615_v23, %v4150_v28  ;;  %v600_v23 = vcombine.high %v510_v18, %v518_v17 }
  0x97   : > { %v512_v27 = vpop.permute.xlu1 %511  ;;  %v508_v29 = vpop.permute.xlu0 %507 }
  0x98   : > { %v632_v32 = vcombine.high %v4369_v25, %v4372_v26  ;;  %v4403_v2 = vrot.slane %v600_v23, %v4150_v28 }
  0x9a   : > { %v4383_v14 = vrot.slane %v632_v32, %v4366_v24  ;;  %v4394_v32 = vrot.slane %v1008_v51, %v4366_v24 }
  0x9b   : > { %v520_v36 = vpop.permute.xlu1 %519  ;;  %v516_v37 = vpop.permute.xlu0 %515 }
  0x9c   : > { %v547_v38 = vcombine.low %v512_v27, %v520_v36  ;;  %v531_v39 = vcombine.low %v508_v29, %v516_v37  ;;  %v3567_v42 = vpack.i.bf16 %v4380_v33, %v4383_v14  ;;  %v548_v1 = vcombine.high %v512_v27, %v520_v36 }
  0x9d   : > { %v532_v23 = vcombine.high %v508_v29, %v516_v37  ;;  %v4437_v29 = vrot.slane %v1091_v53, %v4366_v24 }
  0x9e   : > { %v555_v43 = vrot.slane %v547_v38, %v4150_v28  ;;  %v539_v15 = vrot.slane %v531_v39, %v4150_v28  ;;  %3568 = vrot.lane.b32.xlu0 %v3567_v42, %s3979_s20  ;;  %v4400_v38 = vrot.slane %v616_v16, %v4150_v28  ;;  %v4424_v62 = vrot.slane %v548_v1, %v4150_v28 }
  0x9f   : > { %v744_v50 = vpop.permute.xlu1 %743  ;;  %v740_v19 = vpop.permute.xlu0 %739 }
  0xa0   : > { %v564_v20 = vcombine.high %v539_v15, %v555_v43  ;;  %v563_v63 = vcombine.low %v539_v15, %v555_v43  ;;  %v4450_v15 = vrot.slane %v532_v23, %v4150_v28  ;;  %v4487_v23 = vrot.slane %v319_v0, %v4366_v24 }
  0xa2   : > { %v4397_v3 = vrot.slane %v564_v20, %v4366_v24  ;;  %v647_v20 = vcombine.low %v4403_v2, %v4400_v38  ;;  %v4454_v57 = vrot.slane %v563_v63, %v4366_v24  ;;  %v4473_v63 = vrot.slane %v386_v55, %v4366_v24 }
  0xa3   : > { %v752_v21 = vpop.permute.xlu1 %751  ;;  %v748_v22 = vpop.permute.xlu0 %747  ;;  %v579_v30 = vcombine.low %v4450_v15, %v4424_v62 }
  0xa4   : > { %v845_v39 = vcombine.low %v744_v50, %v752_v21  ;;  %v829_v42 = vcombine.low %v740_v19, %v748_v22  ;;  %v3572_v17 = vpack.i.bf16 %v4394_v32, %v4397_v3  ;;  %v846_v1 = vcombine.high %v744_v50, %v752_v21  ;;  %5683 = vst [vmem:[#allocation9_spill] sm:$0xff] %v4454_v57 }
  0xa5   : > { %5684 = vst [vmem:[#allocation10_spill] sm:$0xff] %v4473_v63 }
  0xa6   : > { %v853_v18 = vrot.slane %v845_v39, %v4150_v28  ;;  %v837_v51 = vrot.slane %v829_v42, %v4150_v28  ;;  %3573 = vrot.lane.b32.xlu0 %v3572_v17, %s3979_s20  ;;  %v401_v39 = vrot.slane %v387_v52, %v4366_v24  ;;  %v4431_v17 = vrot.slane %v647_v20, %v4366_v24 }
  0xa7   : > { %v4412_v16 = vpop.permute.xlu1 %741  ;;  %v4414_v5 = vpop.permute.xlu0 %737  ;;  %v4443_v52 = vrot.slane %v1007_v54, %v4366_v24 }
  0xa8   : > { %v862_v4 = vcombine.high %v837_v51, %v853_v18  ;;  %v861_v20 = vcombine.low %v837_v51, %v853_v18  ;;  %v3582_v31 = vpack.i.bf16 %v4437_v29, %v4431_v17 }
  0xa9   : > { %5682 = vst [vmem:[#allocation8_spill] sm:$0xff] %v4443_v52 }
  0xaa   : > { %v4421_v42 = vrot.slane %v862_v4, %v4366_v24  ;;  %v830_v4 = vcombine.high %v740_v19, %v748_v22  ;;  %v5662_v19 = vmov 0.0   ;;  %v4476_v22 = vrot.slane %v846_v1, %v4150_v28 }
  0xab   : > { %v4426_v27 = vpop.permute.xlu1 %749  ;;  %v4428_v36 = vpop.permute.xlu0 %745  ;;  %v1039_v21 = vcombine.high %v4443_v52, %v5662_v19  ;;  %v595_v55 = vcombine.high %v4454_v57, %v5662_v19  ;;  %v4496_v1 = vrot.slane %v861_v20, %v4366_v24  ;;  %v4514_v20 = vrot.slane %v1023_v56, %v4366_v24 }
  0xac   : > { %v777_v37 = vcombine.low %v4412_v16, %v4426_v27  ;;  %v761_v43 = vcombine.low %v4414_v5, %v4428_v36  ;;  %v3577_v53 = vpack.i.bf16 %v4421_v42, %v401_v39  ;;  %5685 = vst [vmem:[#allocation11_spill] sm:$0xff] %v4476_v22  ;;  %v4479_v18 = vrot.slane %v830_v4, %v4150_v28 }
  0xad   : > { %5687 = vst [vmem:[#allocation13_spill] sm:$0xff] %v4496_v1  ;;  %v893_v57 = vcombine.high %v4496_v1, %v5662_v19  ;;  %v4521_v52 = vrot.slane %v579_v30, %v4366_v24  ;;  %v1108_v56 = vcombine.high %v4380_v33, %v5662_v19  ;;  %v631_v30 = vcombine.low %v4369_v25, %v4372_v26 }
  0xae   : > { %v4457_v46 = vrot.slane %v777_v37, %v4150_v28  ;;  %v4460_v48 = vrot.slane %v761_v43, %v4150_v28  ;;  %3578 = vrot.lane.b32.xlu1 %v3577_v53, %s3979_s20  ;;  %5686 = vst [vmem:[#allocation12_spill] sm:$0xff] %v4479_v18  ;;  %v877_v43 = vcombine.low %v4479_v18, %v4476_v22 }
  0xaf   : > { %v4463_v54 = vpop.permute.xlu1 %1425  ;;  %v4465_v50 = vpop.permute.xlu0 %1421  ;;  %v418_v53 = vcombine.high %v4473_v63, %v5662_v19  ;;  %v3592_v33 = vpack.i.bf16 %v4514_v20, %v4521_v52  ;;  %v5689_v26 = vcombine.high %v4190_v41, %v4187_v40 }
  0xb0   : > { %v794_v51 = vcombine.high %v4460_v48, %v4457_v46  ;;  %v4544_v1 = vrot.slane %v877_v43, %v4366_v24  ;;  %v793_v40 = vcombine.low %v4460_v48, %v4457_v46 }
  0xb1   : > { %v3617_v22 = vpack.i.bf16 %v893_v57, %v418_v53  ;;  %v5690_v57 = vcombine.low %v4174_v35, %v4171_v34  ;;  %v894_v35 = vcombine.high %v4421_v42, %v5662_v19 }
  0xb2   : > { %v4499_v4 = vrot.slane %v794_v51, %v4366_v24  ;;  %3583 = vrot.lane.b32.xlu1 %v3582_v31, %s3981_s21  ;;  %v3612_v51 = vpack.i.bf16 %v1039_v21, %v595_v55  ;;  %v5688_v21 = vcombine.low %v4197_v44, %v4200_v45  ;;  %v4616_v45 = vrot.slane %v793_v40, %v4366_v24 }
  0xb3   : > { %v4502_v0 = vpop.permute.xlu1 %1433  ;;  %v4504_v37 = vpop.permute.xlu0 %1429 }
  0xb4   : > { %v3587_v31 = vpack.i.bf16 %v4499_v4, %v4487_v23  ;;  %v4535_v55 = vrot.slane %v5688_v21, %v4366_v24  ;;  %5696 = vst [vmem:[#allocation18_spill] sm:$0xff] %v4616_v45 }
  0xb6   : > { %3613 = vrot.lane.b32.xlu1 %v3612_v51, %s3982_s22  ;;  %3588 = vrot.lane.b32.xlu0 %v3587_v31, %s3979_s20  ;;  %v648_v51 = vcombine.high %v4403_v2, %v4400_v38  ;;  %v664_v31 = vcombine.high %v4383_v14, %v5662_v19  ;;  %v419_v2 = vcombine.high %v401_v39, %v5662_v19 }
  0xb7   : > { %v4525_v63 = vpop.permute.xlu1 %1877  ;;  %v4527_v18 = vpop.permute.xlu0 %1873  ;;  %v4559_v14 = vrot.slane %v5689_v26, %v4366_v24  ;;  %v4565_v38 = vrot.slane %v5690_v57, %v4366_v24  ;;  %v3597_v43 = vpack.i.bf16 %v4544_v1, %v4535_v55  ;;  %v4573_v39 = vrot.slane %v631_v30, %v4366_v24 }
  0xb8   : > { %v4570_v53 = vrot.slane %v648_v51, %v4366_v24  ;;  %v1527_v51 = vcombine.low %v4463_v54, %v4502_v0  ;;  %v1511_v30 = vcombine.low %v4465_v50, %v4504_v37  ;;  %v5694_v26 = vcombine.low %v4238_v59, %v4235_v58 }
  0xb9   : > { %5691 = vst [vmem:[#allocation14_spill] sm:$0xff] %v4565_v38  ;;  %5692 = vst [vmem:[#allocation15_spill] sm:$0xff] %v4573_v39  ;;  %v1107_v42 = vcombine.high %v4565_v38, %v5662_v19  ;;  %v3637_v38 = vpack.i.bf16 %v894_v35, %v419_v2 }
  0xba   : > { %3618 = vrot.lane.b32.xlu1 %v3617_v22, %s3982_s22  ;;  %3593 = vrot.lane.b32.xlu0 %v3592_v33, %s3981_s21  ;;  %v3622_v22 = vpack.i.bf16 %v1108_v56, %v664_v31  ;;  %v1109_v56 = vcombine.high %v4437_v29, %v5662_v19  ;;  %v3602_v29 = vpack.i.bf16 %v4559_v14, %v4570_v53 }
  0xbb   : > { %v4550_v21 = vpop.permute.xlu1 %1885  ;;  %v4552_v25 = vpop.permute.xlu0 %1881  ;;  %v665_v31 = vcombine.high %v4431_v17, %v5662_v19  ;;  %v663_v33 = vcombine.high %v4573_v39, %v5662_v19  ;;  %v4607_v57 = vrot.slane %v5694_v26, %v4366_v24  ;;  %v4619_v17 = vrot.slane %v1527_v51, %v4150_v28 }
  0xbc   : > { %v1979_v41 = vcombine.low %v4525_v63, %v4550_v21  ;;  %v1963_v34 = vcombine.low %v4527_v18, %v4552_v25  ;;  %v4622_v19 = vrot.slane %v1511_v30, %v4150_v28 }
  0xbd   : > { %5695 = vst [vmem:[#allocation17_spill] sm:$0xff] %v4607_v57  ;;  %v3642_v40 = vpack.i.bf16 %v1109_v56, %v665_v31 }
  0xbe   : > { %3623 = vrot.lane.b32.xlu1 %v3622_v22, %s3983_s23  ;;  %3598 = vrot.lane.b32.xlu0 %v3597_v43, %s3981_s21  ;;  %v4610_v22 = vrot.slane %v1979_v41, %v4150_v28  ;;  %v4613_v43 = vrot.slane %v1963_v34, %v4150_v28  ;;  %v5697_v41 = vmov 0.0   ;;  %v3607_v34 = vpack.i.bf16 %v1107_v42, %v663_v33 }
  0xbf   : > { %v4591_v46 = vpop.permute.xlu1 %1423  ;;  %v4593_v48 = vpop.permute.xlu0 %1419  ;;  %v351_v2 = vcombine.high %v4487_v23, %v5697_v41  ;;  %v826_v35 = vcombine.high %v4499_v4, %v5697_v41  ;;  %v350_v51 = vcombine.high %v4607_v57, %v5697_v41  ;;  %v825_v23 = vcombine.high %v4616_v45, %v5697_v41 }
  0xc0   : > { %5693 = vst [vmem:[#allocation16_spill] sm:$0xff] %v4593_v48  ;;  %v1543_v56 = vcombine.low %v4622_v19, %v4619_v17  ;;  %v1041_v31 = vcombine.high %v4514_v20, %v5697_v41  ;;  %v597_v26 = vcombine.high %v4521_v52, %v5697_v41  ;;  %v596_v57 = vcombine.high %v4397_v3, %v5697_v41 }
  0xc1   : > { %v3657_v33 = vpack.i.bf16 %v826_v35, %v351_v2  ;;  %v1040_v45 = vcombine.high %v4394_v32, %v5697_v41  ;;  %v3627_v39 = vpack.i.bf16 %v825_v23, %v350_v51  ;;  %v778_v20 = vcombine.high %v4412_v16, %v4426_v27 }
  0xc2   : > { %3638 = vrot.lane.b32.xlu1 %v3637_v38, %s3983_s23  ;;  %3603 = vrot.lane.b32.xlu0 %v3602_v29, %s3984_s29  ;;  %v1995_v38 = vcombine.low %v4613_v43, %v4610_v22  ;;  %v762_v52 = vcombine.high %v4414_v5, %v4428_v36  ;;  %v4680_v2 = vrot.slane %v1543_v56, %v4366_v24 }
  0xc3   : > { %v4626_v58 = vpop.permute.xlu1 %1431  ;;  %v4628_v59 = vpop.permute.xlu0 %1427  ;;  %v1741_v35 = vcombine.low %v4286_v6, %v4296_v8  ;;  %v3662_v27 = vpack.i.bf16 %v1041_v31, %v597_v26  ;;  %v1996_v36 = vcombine.high %v4613_v43, %v4610_v22  ;;  %v3632_v51 = vpack.i.bf16 %v1040_v45, %v596_v57 }
  0xc4   : > { %v1459_v30 = vcombine.low %v4591_v46, %v4626_v58  ;;  %v1443_v29 = vcombine.low %v4593_v48, %v4628_v59  ;;  %v4667_v48 = vrot.slane %v1995_v38, %v4366_v24  ;;  %5699 = vst [vmem:[#allocation20_spill] sm:$0xff] %v4680_v2  ;;  %v4702_v31 = vrot.slane %v762_v52, %v4150_v28 }
  0xc5   : > { %v1544_v22 = vcombine.high %v4622_v19, %v4619_v17  ;;  %v1575_v43 = vcombine.high %v4680_v2, %v5697_v41  ;;  %v4721_v19 = vrot.slane %v1741_v35, %v4150_v28 }
  0xc6   : > { %3643 = vrot.lane.b32.xlu1 %v3642_v40, %s3985_s8  ;;  %3608 = vrot.lane.b32.xlu0 %v3607_v34, %s3982_s22  ;;  %v4661_v40 = vrot.slane %v1459_v30, %v4150_v28  ;;  %v4664_v34 = vrot.slane %v1443_v29, %v4150_v28  ;;  %5698 = vst [vmem:[#allocation19_spill] sm:$0xff] %v4667_v48 }
  0xc7   : > { %v4648_v4 = vpop.permute.xlu1 %1875  ;;  %v4650_v42 = vpop.permute.xlu0 %1871  ;;  %v2027_v38 = vcombine.high %v4667_v48, %v5697_v41  ;;  %v1725_v30 = vcombine.low %v4289_v7, %v4299_v9  ;;  %v4697_v29 = vrot.slane %v778_v20, %v4150_v28  ;;  %v4715_v20 = vrot.slane %v1996_v36, %v4366_v24 }
  0xc9   : > { %v3647_v26 = vpack.i.bf16 %v2027_v38, %v1575_v43  ;;  %v4724_v17 = vrot.slane %v1725_v30, %v4150_v28  ;;  %v420_v38 = vcombine.high %v4535_v55, %v5697_v41 }
  0xca   : > { %3658 = vrot.lane.b32.xlu1 %v3657_v33, %s3983_s23  ;;  %3628 = vrot.lane.b32.xlu0 %v3627_v39, %s3982_s22  ;;  %v1475_v39 = vcombine.low %v4664_v34, %v4661_v40 }
  0xcb   : > { %v4675_v3 = vpop.permute.xlu1 %1883  ;;  %v4677_v32 = vpop.permute.xlu0 %1879  ;;  %v1757_v48 = vcombine.low %v4724_v17, %v4721_v19 }
  0xcc   : > { %v1911_v16 = vcombine.low %v4648_v4, %v4675_v3  ;;  %v1895_v5 = vcombine.low %v4650_v42, %v4677_v32  ;;  %v4718_v52 = vrot.slane %v1475_v39, %v4366_v24  ;;  %v4737_v39 = vrot.slane %v1544_v22, %v4366_v24 }
  0xcd   : > { %v895_v22 = vcombine.high %v4544_v1, %v5697_v41 }
  0xce   : > { %v1919_v23 = vrot.slane %v1911_v16, %v4150_v28  ;;  %v1903_v56 = vrot.slane %v1895_v5, %v4150_v28  ;;  %3663 = vrot.lane.b32.xlu1 %v3662_v27, %s3985_s8  ;;  %3633 = vrot.lane.b32.xlu0 %v3632_v51, %s3983_s23  ;;  %5701 = vst [vmem:[#allocation22_spill] sm:$0xff] %v4718_v52 }
  0xcf   : > { %v4708_v45 = vpop.permute.xlu1 %1195  ;;  %v4710_v57 = vpop.permute.xlu0 %1191  ;;  %v809_v5 = vcombine.low %v4702_v31, %v4697_v29  ;;  %v3652_v30 = vpack.i.bf16 %v4715_v20, %v4737_v39  ;;  %v1507_v43 = vcombine.high %v4718_v52, %v5697_v41 }
  0xd0   : > { %5700 = vst [vmem:[#allocation21_spill] sm:$0xff] %v4710_v57  ;;  %v1927_v33 = vcombine.low %v1903_v56, %v1919_v23 }
  0xd1   : > { %v817_v1 = vrot.slane %v809_v5, %v4366_v24 }
  0xd2   : > { %v4727_v16 = vrot.slane %v1927_v33, %v4366_v24  ;;  %3648 = vrot.lane.b32.xlu0 %v3647_v26, %s3982_s22  ;;  %v580_v26 = vcombine.high %v4450_v15, %v4424_v62  ;;  %v5704_v62 = vcombine.low %v4247_v61, %v4244_v60 }
  0xd3   : > { %v4732_v27 = vpop.permute.xlu1 %1203  ;;  %v4734_v36 = vpop.permute.xlu0 %1199 }
  0xd4   : > { %5702 = vst [vmem:[#allocation23_spill] sm:$0xff] %v4727_v16  ;;  %5703 = vst [vmem:[#allocation24_spill] sm:$0xff] %v4734_v36  ;;  %v1297_v35 = vcombine.low %v4708_v45, %v4732_v27  ;;  %v1281_v51 = vcombine.low %v4710_v57, %v4734_v36  ;;  %v1959_v33 = vcombine.high %v4727_v16, %v5697_v41 }
  0xd5   : > { %v342_v15 = vrot.slane %v5704_v62, %v4366_v24  ;;  %v1928_v36 = vcombine.high %v1903_v56, %v1919_v23  ;;  %v1657_v62 = vcombine.low %v4317_v11, %v4327_v13  ;;  %v594_v5 = vrot.slane %v580_v26, %v4366_v24 }
  0xd6   : > { %v4756_v2 = vrot.slane %v1297_v35, %v4150_v28  ;;  %v4759_v55 = vrot.slane %v1281_v51, %v4150_v28  ;;  %3653 = vrot.lane.b32.xlu0 %v3652_v30, %s3979_s20  ;;  %v3667_v52 = vpack.i.bf16 %v1959_v33, %v1507_v43  ;;  %v1673_v35 = vcombine.low %v4314_v10, %v4324_v12 }
  0xd7   : > { %v4764_v57 = vpop.permute.xlu1 %1193  ;;  %v4766_v16 = vpop.permute.xlu0 %1189  ;;  %v3677_v30 = vpack.i.bf16 %v895_v22, %v420_v38  ;;  %v666_v43 = vcombine.high %v4570_v53, %v5697_v41  ;;  %v1110_v33 = vcombine.high %v4559_v14, %v5697_v41  ;;  %v5705_v10 = vcombine.high %v4216_v49, %v4206_v47 }
  0xd8   : > { %v1313_v51 = vcombine.low %v4759_v55, %v4756_v2  ;;  %3668 = vrot.lane.b32.xlu1 %v3667_v52, %s3982_s22  ;;  %v4790_v23 = vrot.slane %v1757_v48, %v4366_v24  ;;  %v1476_v56 = vcombine.high %v4664_v34, %v4661_v40  ;;  %v3672_v14 = vpack.i.bf16 %v817_v1, %v342_v15 }
  0xd9   : > { %v1038_v12 = vrot.slane %v5705_v10, %v4366_v24  ;;  %v3687_v10 = vpack.i.bf16 %v1110_v33, %v666_v43  ;;  %v1942_v48 = vrot.slane %v1928_v36, %v4366_v24  ;;  %v4809_v40 = vrot.slane %v1673_v35, %v4150_v28 }
  0xda   : > { %v4795_v53 = vrot.slane %v1313_v51, %v4366_v24  ;;  %3678 = vrot.lane.b32.xlu0 %v3677_v30, %s3985_s8  ;;  %v4812_v34 = vrot.slane %v1657_v62, %v4150_v28  ;;  %v1789_v26 = vcombine.high %v4790_v23, %v5697_v41  ;;  %v1490_v36 = vrot.slane %v1476_v56, %v4366_v24 }
  0xdb   : > { %v4798_v52 = vpop.permute.xlu1 %1201  ;;  %v4800_v38 = vpop.permute.xlu0 %1197  ;;  %v3682_v22 = vpack.i.bf16 %v1038_v12, %v594_v5  ;;  %v352_v43 = vcombine.high %v342_v15, %v5697_v41  ;;  %v827_v33 = vcombine.high %v817_v1, %v5697_v41  ;;  %v1980_v62 = vcombine.high %v4525_v63, %v4550_v21  ;;  %v5708_v1 = vld [vmem:[#allocation12_spill] sm:$0xff] }
  0xdc   : > { %5706 = vst [vmem:[#allocation25_spill] sm:$0xff] %v4795_v53  ;;  %v1229_v47 = vcombine.low %v4764_v57, %v4798_v52  ;;  %v1213_v49 = vcombine.low %v4766_v16, %v4800_v38  ;;  %3673 = vrot.lane.b32.xlu1 %v3672_v14, %s3981_s21  ;;  %v1345_v35 = vcombine.high %v4795_v53, %v5697_v41 }
  0xdd   : > { %v1964_v14 = vcombine.high %v4527_v18, %v4552_v25  ;;  %v1512_v56 = vcombine.high %v4465_v50, %v4504_v37  ;;  %v1689_v15 = vcombine.low %v4812_v34, %v4809_v40  ;;  %v2028_v21 = vcombine.high %v4715_v20, %v5697_v41 }
  0xde   : > { %3688 = vrot.lane.b32.xlu0 %v3687_v10, %s3986_s9  ;;  %v4818_v51 = vrot.slane %v1229_v47, %v4150_v28  ;;  %v4821_v30 = vrot.slane %v1213_v49, %v4150_v28  ;;  %v3697_v47 = vpack.i.bf16 %v1942_v48, %v1490_v36  ;;  %v1528_v49 = vcombine.high %v4463_v54, %v4502_v0  ;;  %v5707_v10 = vld [vmem:[#allocation11_spill] sm:$0xff] }
  0xdf   : > { %v878_v53 = vcombine.high %v5708_v1, %v5707_v10  ;;  %v3692_v18 = vpack.i.bf16 %v1789_v26, %v1345_v35  ;;  %v3707_v25 = vpack.i.bf16 %v827_v33, %v352_v43  ;;  %v598_v54 = vcombine.high %v594_v5, %v5697_v41 }
  0xe0   : > { %3683 = vrot.lane.b32.xlu1 %v3682_v22, %s3984_s29  ;;  %v1245_v63 = vcombine.low %v4821_v30, %v4818_v51  ;;  %v1042_v50 = vcombine.high %v1038_v12, %v5697_v41  ;;  %v1758_v0 = vcombine.high %v4724_v17, %v4721_v19  ;;  %v4851_v37 = vrot.slane %v1980_v62, %v4150_v28  ;;  %v5709_v19 = vld [vmem:[#allocation5_spill] sm:$0xff] }
  0xe1   : > { %v4854_v22 = vrot.slane %v1964_v14, %v4150_v28  ;;  %v1314_v26 = vcombine.high %v4759_v55, %v4756_v2  ;;  %v1576_v20 = vcombine.high %v4737_v39, %v5697_v41  ;;  %v4862_v5 = vrot.slane %v1528_v49, %v4150_v28 }
  0xe2   : > { %3698 = vrot.lane.b32.xlu0 %v3697_v47, %s3979_s20  ;;  %v4865_v12 = vrot.slane %v1512_v56, %v4150_v28  ;;  %v5710_v17 = vcombine.high %v4197_v44, %v5709_v19  ;;  %v4872_v43 = vrot.slane %v1245_v63, %v4366_v24  ;;  %v892_v55 = vrot.slane %v878_v53, %v4366_v24 }
  0xe3   : > { %v3702_v2 = vpack.i.bf16 %v2028_v21, %v1576_v20  ;;  %v4877_v39 = vrot.slane %v1689_v15, %v4366_v24  ;;  %v2011_v33 = vcombine.low %v4854_v22, %v4851_v37  ;;  %v3717_v62 = vpack.i.bf16 %v1042_v50, %v598_v54 }
  0xe4   : > { %3693 = vrot.lane.b32.xlu1 %v3692_v18, %s3982_s22  ;;  %v417_v35 = vrot.slane %v5710_v17, %v4366_v24  ;;  %v1328_v44 = vrot.slane %v1314_v26, %v4366_v24  ;;  %v1772_v14 = vrot.slane %v1758_v0, %v4366_v24  ;;  %v1559_v47 = vcombine.low %v4865_v12, %v4862_v5 }
  0xe5   : > { %v1277_v53 = vcombine.high %v4872_v43, %v5697_v41  ;;  %v1721_v56 = vcombine.high %v4877_v39, %v5697_v41  ;;  %v2019_v10 = vrot.slane %v2011_v33, %v4366_v24  ;;  %v810_v1 = vcombine.high %v4702_v31, %v4697_v29  ;;  %v5711_v31 = vld [vmem:[#allocation16_spill] sm:$0xff] }
  0xe6   : > { %3708 = vrot.lane.b32.xlu0 %v3707_v25, %s3985_s8  ;;  %v3712_v49 = vpack.i.bf16 %v892_v55, %v417_v35  ;;  %v3727_v15 = vpack.i.bf16 %v1772_v14, %v1328_v44  ;;  %v1567_v63 = vrot.slane %v1559_v47, %v4366_v24  ;;  %v1912_v18 = vcombine.high %v4648_v4, %v4675_v3  ;;  %v4910_v3 = vpop.permute.xlu1 %2103 }
  0xe7   : > { %v1896_v21 = vcombine.high %v4650_v42, %v4677_v32  ;;  %v3722_v25 = vpack.i.bf16 %v1721_v56, %v1277_v53  ;;  %v1960_v54 = vcombine.high %v1942_v48, %v5697_v41  ;;  %v421_v50 = vcombine.high %v417_v35, %v5697_v41  ;;  %v4912_v32 = vpop.permute.xlu0 %2101 }
  0xe8   : > { %3703 = vrot.lane.b32.xlu1 %v3702_v2, %s3983_s23  ;;  %v896_v0 = vcombine.high %v892_v55, %v5697_v41  ;;  %v1460_v29 = vcombine.high %v4591_v46, %v4626_v58  ;;  %v1444_v26 = vcombine.high %v5711_v31, %v4628_v59  ;;  %v3737_v4 = vpack.i.bf16 %v2019_v10, %v1567_v63 }
  0xe9   : > { %v1508_v42 = vcombine.high %v1490_v36, %v5697_v41  ;;  %v5712_v48 = vcombine.high %v4247_v61, %v4244_v60  ;;  %v824_v19 = vrot.slane %v810_v1, %v4366_v24  ;;  %v1690_v46 = vcombine.high %v4812_v34, %v4809_v40 }
  0xea   : > { %3718 = vrot.lane.b32.xlu0 %v3717_v62, %s3986_s9  ;;  %v4922_v58 = vrot.slane %v1912_v18, %v4150_v28  ;;  %v4925_v59 = vrot.slane %v1896_v21, %v4150_v28  ;;  %v1246_v36 = vcombine.high %v4821_v30, %v4818_v51  ;;  %v1742_v60 = vcombine.high %v4286_v6, %v4296_v8  ;;  %v5713_v6 = vld [vmem:[#allocation24_spill] sm:$0xff]  ;;  %v5714_v8 = vld [vmem:[#allocation21_spill] sm:$0xff] }
  0xeb   : > { %v349_v20 = vrot.slane %v5712_v48, %v4366_v24  ;;  %v3732_v17 = vpack.i.bf16 %v1960_v54, %v1508_v42  ;;  %v1790_v61 = vcombine.high %v1772_v14, %v5697_v41  ;;  %v4934_v35 = vrot.slane %v1460_v29, %v4150_v28  ;;  %v4961_v53 = vpop.permute.xlu0 %2105 }
  0xec   : > { %3713 = vrot.lane.b32.xlu1 %v3712_v49, %s3984_s29  ;;  %v4937_v40 = vrot.slane %v1444_v26, %v4150_v28  ;;  %v3747_v34 = vpack.i.bf16 %v896_v0, %v421_v50  ;;  %v1346_v2 = vcombine.high %v1328_v44, %v5697_v41  ;;  %v1726_v51 = vcombine.high %v4289_v7, %v4299_v9  ;;  %v5715_v7 = vld [vmem:[#allocation7_spill] sm:$0xff]  ;;  %v5716_v9 = vld [vmem:[#allocation6_spill] sm:$0xff] }
  0xed   : > { %v1298_v30 = vcombine.high %v4708_v45, %v4732_v27  ;;  %v1282_v55 = vcombine.high %v5714_v8, %v5713_v6  ;;  %v1943_v33 = vcombine.low %v4925_v59, %v4922_v58  ;;  %v3742_v62 = vpack.i.bf16 %v824_v19, %v349_v20  ;;  %v4959_v27 = vpop.permute.xlu1 %2107 }
  0xee   : > { %3728 = vrot.lane.b32.xlu0 %v3727_v15, %s3979_s20  ;;  %v1260_v14 = vrot.slane %v1246_v36, %v4366_v24  ;;  %v1704_v47 = vrot.slane %v1690_v46, %v4366_v24  ;;  %v4953_v44 = vrot.slane %v1742_v60, %v4150_v28  ;;  %v1674_v49 = vcombine.high %v5716_v9, %v5715_v7 }
  0xef   : > { %v1658_v45 = vcombine.high %v4317_v11, %v4327_v13  ;;  %v2029_v56 = vcombine.high %v2019_v10, %v5697_v41  ;;  %v1491_v15 = vcombine.low %v4937_v40, %v4934_v35  ;;  %v1230_v1 = vcombine.high %v4764_v57, %v4798_v52  ;;  %v5003_v42 = vpop.permute.xlu0 %2109 }
  0xf0   : > { %3723 = vrot.lane.b32.xlu1 %v3722_v25, %s3982_s22  ;;  %v1214_v18 = vcombine.high %v4766_v16, %v4800_v38  ;;  %v3757_v21 = vpack.i.bf16 %v1790_v61, %v1346_v2  ;;  %v4972_v11 = vrot.slane %v1726_v51, %v4150_v28  ;;  %v4975_v13 = vrot.slane %v1298_v30, %v4150_v28 }
  0xf1   : > { %v4978_v10 = vrot.slane %v1282_v55, %v4150_v28  ;;  %v1577_v25 = vcombine.high %v1567_v63, %v5697_v41  ;;  %v3752_v57 = vpack.i.bf16 %v1704_v47, %v1260_v14  ;;  %v1951_v52 = vrot.slane %v1943_v33, %v4366_v24 }
  0xf2   : > { %3738 = vrot.lane.b32.xlu0 %v3737_v4, %s3981_s21  ;;  %v4984_v16 = vrot.slane %v1674_v49, %v4150_v28  ;;  %v4987_v38 = vrot.slane %v1658_v45, %v4150_v28  ;;  %v1722_v50 = vcombine.high %v1704_v47, %v5697_v41  ;;  %v4991_v0 = vrot.slane %v1230_v1, %v4150_v28  ;;  %v5001_v4 = vpop.permute.xlu1 %2111 }
  0xf3   : > { %v3767_v54 = vpack.i.bf16 %v2029_v56, %v1577_v25  ;;  %v4994_v29 = vrot.slane %v1214_v18, %v4150_v28  ;;  %v1499_v63 = vrot.slane %v1491_v15, %v4366_v24  ;;  %v1278_v31 = vcombine.high %v1260_v14, %v5697_v41  ;;  %v5024_v33 = vpop.permute.xlu0 %2113 }
  0xf4   : > { %3733 = vrot.lane.b32.xlu1 %v3732_v17, %s3983_s23  ;;  %v1329_v26 = vcombine.low %v4978_v10, %v4975_v13  ;;  %v1773_v48 = vcombine.low %v4972_v11, %v4953_v44  ;;  %v353_v36 = vcombine.high %v349_v20, %v5697_v41  ;;  %v828_v17 = vcombine.high %v824_v19, %v5697_v41 }
  0xf5   : > { %v3762_v46 = vpack.i.bf16 %v1951_v52, %v1499_v63  ;;  %v1261_v60 = vcombine.low %v4994_v29, %v4991_v0  ;;  %v3777_v61 = vpack.i.bf16 %v1722_v50, %v1278_v31  ;;  %v1705_v2 = vcombine.low %v4987_v38, %v4984_v16 }
  0xf6   : > { %3748 = vrot.lane.b32.xlu0 %v3747_v34, %s3986_s9  ;;  %v1961_v34 = vcombine.high %v1951_v52, %v5697_v41  ;;  %v2012_v51 = vcombine.high %v4854_v22, %v4851_v37  ;;  %v1337_v30 = vrot.slane %v1329_v26, %v4366_v24  ;;  %v1781_v20 = vrot.slane %v1773_v48, %v4366_v24  ;;  %v2116_v55 = vpop.permute.xlu1 %2115 }
  0xf7   : > { %v3772_v19 = vpack.i.bf16 %v828_v17, %v353_v36  ;;  %v1509_v6 = vcombine.high %v1499_v63, %v5697_v41  ;;  %v1560_v8 = vcombine.high %v4865_v12, %v4862_v5  ;;  %v1269_v22 = vrot.slane %v1261_v60, %v4366_v24 }
  0xf8   : > { %3743 = vrot.lane.b32.xlu1 %v3742_v62, %s3984_s29  ;;  %v1944_v62 = vcombine.high %v4925_v59, %v4922_v58  ;;  %v1713_v14 = vrot.slane %v1705_v2, %v4366_v24  ;;  %v1492_v47 = vcombine.high %v4937_v40, %v4934_v35  ;;  %v3782_v7 = vpack.i.bf16 %v1781_v20, %v1337_v30 }
  0xf9   : > { %v3787_v37 = vpack.i.bf16 %v1961_v34, %v1509_v6  ;;  %v2026_v9 = vrot.slane %v2012_v51, %v4366_v24  ;;  %v2193_v5 = vcombine.low %v4910_v3, %v5001_v4  ;;  %v2125_v12 = vcombine.low %v4912_v32, %v5003_v42 }
  0xfa   : > { %3758 = vrot.lane.b32.xlu0 %v3757_v21, %s3983_s23  ;;  %v2209_v58 = vcombine.low %v4959_v27, %v2116_v55  ;;  %v2141_v59 = vcombine.low %v4961_v53, %v5024_v33  ;;  %v1574_v49 = vrot.slane %v1560_v8, %v4366_v24  ;;  %v3797_v35 = vpack.i.bf16 %v1713_v14, %v1269_v22 }
  0xfb   : > { %v1958_v40 = vrot.slane %v1944_v62, %v4366_v24  ;;  %v1506_v56 = vrot.slane %v1492_v47, %v4366_v24  ;;  %v1347_v15 = vcombine.high %v1337_v30, %v5697_v41  ;;  %v1791_v1 = vcombine.high %v1781_v20, %v5697_v41 }
  0xfc   : > { %3753 = vrot.lane.b32.xlu1 %v3752_v57, %s3979_s20  ;;  %v3792_v45 = vpack.i.bf16 %v2026_v9, %v1574_v49  ;;  %v2201_v18 = vrot.slane %v2193_v5, %v4150_v28  ;;  %v2133_v21 = vrot.slane %v2125_v12, %v4150_v28  ;;  %v2217_v25 = vrot.slane %v2209_v58, %v4150_v28 }
  0xfd   : > { %v2149_v57 = vrot.slane %v2141_v59, %v4150_v28  ;;  %v1723_v52 = vcombine.high %v1713_v14, %v5697_v41  ;;  %v3807_v50 = vpack.i.bf16 %v1958_v40, %v1506_v56  ;;  %v2030_v63 = vcombine.high %v2026_v9, %v5697_v41 }
  0xfe   : > { %3768 = vrot.lane.b32.xlu0 %v3767_v54, %s3985_s8  ;;  %v1279_v54 = vcombine.high %v1269_v22, %v5697_v41  ;;  %v1774_v31 = vcombine.high %v4972_v11, %v4953_v44  ;;  %v1706_v26 = vcombine.high %v4987_v38, %v4984_v16  ;;  %v1330_v48 = vcombine.high %v4978_v10, %v4975_v13 }
  0xff   : > { %v2157_v36 = vcombine.low %v2133_v21, %v2149_v57  ;;  %v3802_v17 = vpack.i.bf16 %v1791_v1, %v1347_v15  ;;  %v1262_v60 = vcombine.high %v4994_v29, %v4991_v0  ;;  %v2210_v34 = vcombine.high %v4959_v27, %v2116_v55 }
 0x100   : > { %3763 = vrot.lane.b32.xlu1 %v3762_v46, %s3981_s21  ;;  %v2225_v46 = vcombine.low %v2201_v18, %v2217_v25  ;;  %v1962_v44 = vcombine.high %v1958_v40, %v5697_v41  ;;  %v2126_v11 = vcombine.high %v4912_v32, %v5003_v42  ;;  %v2142_v13 = vcombine.high %v4961_v53, %v5024_v33 }
 0x101   : > { %v3817_v10 = vpack.i.bf16 %v1723_v52, %v1279_v54  ;;  %v1578_v16 = vcombine.high %v1574_v49, %v5697_v41  ;;  %v1510_v38 = vcombine.high %v1506_v56, %v5697_v41  ;;  %v1788_v0 = vrot.slane %v1774_v31, %v4366_v24 }
 0x102   : > { %3778 = vrot.lane.b32.xlu0 %v3777_v61, %s3983_s23  ;;  %v2194_v61 = vcombine.high %v4910_v3, %v5001_v4  ;;  %v1720_v3 = vrot.slane %v1706_v26, %v4366_v24  ;;  %v1344_v27 = vrot.slane %v1330_v48, %v4366_v24  ;;  %v5081_v29 = vrot.slane %v2225_v46, %v4366_v24 }
 0x103   : > { %v5084_v32 = vrot.slane %v2157_v36, %v4366_v24  ;;  %v3812_v53 = vpack.i.bf16 %v2030_v63, %v1578_v16  ;;  %v1276_v4 = vrot.slane %v1262_v60, %v4366_v24  ;;  %v2224_v2 = vrot.slane %v2210_v34, %v4150_v28 }
 0x104   : > { %3773 = vrot.lane.b32.xlu1 %v3772_v19, %s3986_s9  ;;  %v2208_v42 = vrot.slane %v2194_v61, %v4150_v28  ;;  %v3827_v51 = vpack.i.bf16 %v1962_v44, %v1510_v38  ;;  %v2140_v30 = vrot.slane %v2126_v11, %v4150_v28  ;;  %v2226_v20 = vcombine.high %v2201_v18, %v2217_v25  ;;  %v5717_v38 = vld [vmem:[#allocation8_spill] sm:$0xff] }
 0x105   : > { %v2156_v19 = vrot.slane %v2142_v13, %v4150_v28  ;;  %v2158_v6 = vcombine.high %v2133_v21, %v2149_v57  ;;  %v3822_v8 = vpack.i.bf16 %v1788_v0, %v1344_v27  ;;  %v2189_v55 = vcombine.high %v5084_v32, %v5697_v41 }
 0x106   : > { %3788 = vrot.lane.b32.xlu0 %v3787_v37, %s3985_s8  ;;  %v2257_v33 = vcombine.high %v5081_v29, %v5697_v41  ;;  %v2241_v62 = vcombine.low %v2208_v42, %v2224_v2  ;;  %v2240_v37 = vrot.slane %v2226_v20, %v4366_v24  ;;  %v3837_v47 = vpack.i.bf16 %v1720_v3, %v1276_v4 }
 0x107   : > { %v2172_v22 = vrot.slane %v2158_v6, %v4366_v24  ;;  %v2173_v14 = vcombine.low %v2140_v30, %v2156_v19  ;;  %v1348_v9 = vcombine.high %v1344_v27, %v5697_v41  ;;  %v1792_v5 = vcombine.high %v1788_v0, %v5697_v41 }
 0x108   : > { %3783 = vrot.lane.b32.xlu1 %v3782_v7, %s3981_s21  ;;  %v3832_v7 = vpack.i.bf16 %v2257_v33, %v2189_v55  ;;  %v2242_v12 = vcombine.high %v2208_v42, %v2224_v2  ;;  %v2249_v58 = vrot.slane %v2241_v62, %v4366_v24  ;;  %v2174_v59 = vcombine.high %v2140_v30, %v2156_v19 }
 0x109   : > { %v2181_v49 = vrot.slane %v2173_v14, %v4366_v24  ;;  %v2190_v40 = vcombine.high %v2172_v22, %v5697_v41  ;;  %v3842_v56 = vpack.i.bf16 %v1792_v5, %v1348_v9  ;;  %v1280_v15 = vcombine.high %v1276_v4, %v5697_v41 }
 0x10a   : > { %3798 = vrot.lane.b32.xlu0 %v3797_v35, %s3981_s21  ;;  %v3847_v35 = vpack.i.bf16 %v2240_v37, %v2172_v22  ;;  %v1724_v1 = vcombine.high %v1720_v3, %v5697_v41  ;;  %v2256_v18 = vrot.slane %v2242_v12, %v4366_v24  ;;  %v2188_v21 = vrot.slane %v2174_v59, %v4366_v24  ;;  %v5718_v3 = vld [vmem:[#allocation9_spill] sm:$0xff] }
 0x10b   : > { %v2191_v54 = vcombine.high %v2181_v49, %v5697_v41  ;;  %v3987_v60 = vmov 0  }
 0x10c   : > { %3793 = vrot.lane.b32.xlu1 %v3792_v45, %s3984_s29  ;;  %v2258_v45 = vcombine.high %v2240_v37, %v5697_v41  ;;  %v3852_v63 = vpack.i.bf16 %v1724_v1, %v1280_v15  ;;  %v2192_v46 = vcombine.high %v2188_v21, %v5697_v41  ;;  %v2260_v36 = vcombine.high %v2256_v18, %v5697_v41  ;;  %v5719_v1 = vld [vmem:[#allocation19_spill] sm:$0xff] }
 0x10d   : > { %2420 = vmatprep.mubr.bf16.mxu0 %v3987_v60  ;;  %3882 = vset.pattern.permute.xlu1 %v3987_v60  ;;  %v3872_v16 = vpack.i.bf16 %v2256_v18, %v2188_v21  ;;  %v5720_v21 = vld [vmem:[#allocation20_spill] sm:$0xff] }
 0x10e   : > { %3808 = vrot.lane.b32.xlu0 %v3807_v50, %s3984_s29  ;;  %v3857_v52 = vpack.i.bf16 %v2258_v45, %v2190_v40  ;;  %v2259_v50 = vcombine.high %v2249_v58, %v5697_v41  ;;  %v3877_v44 = vpack.i.bf16 %v2260_v36, %v2192_v46  ;;  %2482 = vmatprep.mubr.bf16.mxu1 %v3987_v60 }
 0x10f   : > { %3883 = vset.pattern.permute.xlu0 %v3987_v60 }
 0x110   : > { %3803 = vrot.lane.b32.xlu1 %v3802_v17, %s3985_s8  ;;  %v5114_v25 = vpop.permute.xlu0 %3568  ;;  %v3867_v48 = vpack.i.bf16 %v2259_v50, %v2191_v54  ;;  %v3862_v17 = vpack.i.bf16 %v2249_v58, %v2181_v49 }
 0x112   : > { %3818 = vrot.lane.b32.xlu0 %v3817_v10, %s3985_s8 }
 0x114   : > { %3813 = vrot.lane.b32.xlu1 %v3812_v53, %s3986_s9 }
 0x116   : > { %3828 = vrot.lane.b32.xlu0 %v3827_v51, %s3986_s9  ;;  %v2371_v51 = vld [vmem:[%s5648_s2] sm:$0xff] }
 0x118   : > { %3823 = vrot.lane.b32.xlu1 %v3822_v8, %s3984_s29  ;;  %v3574_v31 = vpop.permute.xlu0 %3573 }
 0x119   : > { %v3576_v10 = vunpack.i.h.bf16 %v3574_v31  ;;  %v3575_v41 = vunpack.i.l.bf16 %v3574_v31 }
 0x11a   : > { %3838 = vrot.lane.b32.xlu0 %v3837_v47, %s3984_s29 }
 0x11c   : > { %3833 = vrot.lane.b32.xlu1 %v3832_v7, %s3982_s22 }
 0x11e   : > { %3848 = vrot.lane.b32.xlu0 %v3847_v35, %s3979_s20 }
 0x120   : > { %v5116_v57 = vpop.permute.xlu1 %3578  ;;  %3843 = vrot.lane.b32.xlu1 %v3842_v56, %s3986_s9 }
 0x122   : > { %3858 = vrot.lane.b32.xlu0 %v3857_v52, %s3983_s23 }
 0x124   : > { %v5122_v26 = vpop.permute.xlu1 %3583  ;;  %3853 = vrot.lane.b32.xlu1 %v3852_v63, %s3986_s9 }
 0x126   : > { %3868 = vrot.lane.b32.xlu0 %v3867_v48, %s3985_s8 }
 0x128   : > { %v3614_v61 = vpop.permute.xlu1 %3613  ;;  %v5128_v34 = vpop.permute.xlu0 %3588  ;;  %3863 = vrot.lane.b32.xlu1 %v3862_v17, %s3981_s21 }
 0x129   : > { %v3616_v11 = vunpack.i.h.bf16 %v3614_v61  ;;  %v3615_v13 = vunpack.i.l.bf16 %v3614_v61 }
 0x12a   : > { %3878 = vrot.lane.b32.xlu0 %v3877_v44, %s3986_s9 }
 0x12b   : > { %v1167_v0 = vsel %vm478_vm0, %v5717_v38, %v3616_v11  ;;  %v723_v27 = vsel %vm478_vm0, %v5718_v3, %v3615_v13  ;;  %v5721_v11 = vld [vmem:[#allocation14_spill] sm:$0xff]  ;;  %v3570_v38 = vunpack.i.l.bf16 %v5114_v25 }
 0x12c   : > { %v5136_v53 = vpop.permute.xlu1 %3618  ;;  %v3594_v4 = vpop.permute.xlu0 %3593  ;;  %3873 = vrot.lane.b32.xlu1 %v3872_v16, %s3984_s29  ;;  %v724_v42 = vsel %vm480_vm1, %v723_v27, %v3575_v41  ;;  %v1168_v2 = vsel %vm480_vm1, %v1167_v0, %v3576_v10  ;;  %v5722_v10 = vld [vmem:[#allocation15_spill] sm:$0xff]  ;;  %v3571_v16 = vunpack.i.h.bf16 %v5114_v25 }
 0x12d   : > { %v3596_v47 = vunpack.i.h.bf16 %v3594_v4  ;;  %v3595_v7 = vunpack.i.l.bf16 %v3594_v4 }
 0x130   : > { %v3624_v30 = vpop.permute.xlu1 %3623  ;;  %v5144_v20 = vpop.permute.xlu0 %3598  ;;  %2374 = vperm.xlu1 %3882, %v2371_v51  }
 0x131   : > { %v3626_v51 = vunpack.i.h.bf16 %v3624_v30 }
 0x134   : > { %v5146_v19 = vpop.permute.xlu1 %3638  ;;  %v5148_v6 = vpop.permute.xlu0 %3603 }
 0x138   : > { %v3609_v8 = vpop.permute.xlu0 %3608  ;;  %v5150_v55 = vpop.permute.xlu1 %3643 }
 0x139   : > { %v3611_v17 = vunpack.i.h.bf16 %v3609_v8  ;;  %v3610_v60 = vunpack.i.l.bf16 %v3609_v8  ;;  %v3625_v8 = vunpack.i.l.bf16 %v3624_v30  ;;  %v3580_v30 = vunpack.i.l.bf16 %v5116_v57 }
 0x13b   : > { %v1174_v13 = vsel %vm478_vm0, %v5721_v11, %v3611_v17  ;;  %v730_v41 = vsel %vm478_vm0, %v5722_v10, %v3610_v60  ;;  %v3600_v10 = vunpack.i.l.bf16 %v5144_v20 }
 0x13c   : > { %v5152_v33 = vpop.permute.xlu0 %3628  ;;  %v5154_v62 = vpop.permute.xlu1 %3658  ;;  %v1175_v3 = vsel %vm480_vm1, %v1174_v13, %v3571_v16  ;;  %v731_v27 = vsel %vm480_vm1, %v730_v41, %v3570_v38  ;;  %v3605_v41 = vunpack.i.l.bf16 %v5148_v6 }
 0x13d   : > { %v732_v25 = vsel %vm482_vm2, %v731_v27, %v3625_v8 }
 0x140   : > { %v3634_v37 = vpop.permute.xlu0 %3633  ;;  %v5164_v49 = vpop.permute.xlu1 %3663 }
 0x141   : > { %v3636_v22 = vunpack.i.h.bf16 %v3634_v37  ;;  %v3635_v14 = vunpack.i.l.bf16 %v3634_v37 }
 0x143   : > { %v1169_v9 = vsel %vm482_vm2, %v1168_v2, %v3636_v22  ;;  %v725_v5 = vsel %vm482_vm2, %v724_v42, %v3635_v14  ;;  %v3621_v42 = vunpack.i.h.bf16 %v5136_v53  ;;  %v3620_v2 = vunpack.i.l.bf16 %v5136_v53 }
 0x144   : > { %v3649_v12 = vpop.permute.xlu0 %3648  ;;  %v5159_v58 = vsel %vm484_vm3, %v1169_v9, %v3596_v47  ;;  %v5162_v59 = vsel %vm484_vm3, %v725_v5, %v3595_v7  ;;  %v1176_v22 = vsel %vm482_vm2, %v1175_v3, %v3626_v51  ;;  %v3586_v14 = vunpack.i.h.bf16 %v5122_v26  ;;  %v5723_v9 = vld [vmem:[#allocation13_spill] sm:$0xff] }
 0x145   : > { %v3651_v35 = vunpack.i.h.bf16 %v3649_v12  ;;  %v3650_v40 = vunpack.i.l.bf16 %v3649_v12  ;;  %v3585_v47 = vunpack.i.l.bf16 %v5122_v26  ;;  %v960_v5 = vsel %vm478_vm0, %v5723_v9, %v3621_v42  ;;  %v5724_v12 = vld [vmem:[#allocation10_spill] sm:$0xff] }
 0x146   : > { %v3581_v53 = vunpack.i.h.bf16 %v5116_v57  ;;  %v3641_v26 = vunpack.i.h.bf16 %v5146_v19 }
 0x147   : > { %v2094_v18 = vsel %vm478_vm0, %v5719_v1, %v3651_v35  ;;  %v1642_v52 = vsel %vm478_vm0, %v5720_v21, %v3650_v40  ;;  %v492_v35 = vsel %vm478_vm0, %v5724_v12, %v3620_v2  ;;  %v3646_v1 = vunpack.i.h.bf16 %v5150_v55 }
 0x148   : > { %v3654_v45 = vpop.permute.xlu0 %3653  ;;  %v493_v21 = vsel %vm480_vm1, %v492_v35, %v3580_v30 }
 0x149   : > { %v3656_v56 = vunpack.i.h.bf16 %v3654_v45  ;;  %v3655_v15 = vunpack.i.l.bf16 %v3654_v45  ;;  %v733_v45 = vsel %vm484_vm3, %v732_v25, %v3585_v47 }
 0x14a   : > { %v5170_v54 = vpop.permute.xlu1 %3668 }
 0x14b   : > { %v5173_v50 = vsel %vm480_vm1, %v1642_v52, %v3655_v15  ;;  %v5176_v63 = vsel %vm480_vm1, %v2094_v18, %v3656_v56  ;;  %v1177_v56 = vsel %vm484_vm3, %v1176_v22, %v3586_v14  ;;  %v3640_v15 = vunpack.i.l.bf16 %v5146_v19 }
 0x14c   : > { %v5178_v31 = vpop.permute.xlu0 %3678  ;;  %v3645_v18 = vunpack.i.l.bf16 %v5150_v55  ;;  %v961_v52 = vsel %vm480_vm1, %v960_v5, %v3581_v53  ;;  %v1178_v13 = vsel %vm486_vm4, %v1177_v56, %v3646_v1  ;;  %v3601_v19 = vunpack.i.h.bf16 %v5144_v20 }
 0x14d   : > { %v3606_v55 = vunpack.i.h.bf16 %v5148_v6  ;;  %v494_v38 = vsel %vm482_vm2, %v493_v21, %v3640_v15  ;;  %v962_v3 = vsel %vm482_vm2, %v961_v52, %v3641_v26  ;;  %v3680_v27 = vunpack.i.l.bf16 %v5178_v31 }
 0x14e   : > { %v5180_v48 = vpop.permute.xlu1 %3673  ;;  %v734_v11 = vsel %vm486_vm4, %v733_v45, %v3645_v18  ;;  %v495_v25 = vsel %vm484_vm3, %v494_v38, %v3600_v10  ;;  %v963_v14 = vsel %vm484_vm3, %v962_v3, %v3601_v19  ;;  %v3631_v56 = vunpack.i.h.bf16 %v5152_v33  ;;  %v5725_v19 = vld [vmem:[#allocation18_spill] sm:$0xff]  ;;  %v5726_v10 = vld [vmem:[#allocation17_spill] sm:$0xff] }
 0x14f   : > { %v735_v20 = vsel %vm488_vm5, %v734_v11, %v3605_v41  ;;  %v1179_v8 = vsel %vm488_vm5, %v1178_v13, %v3606_v55  ;;  %v3630_v26 = vunpack.i.l.bf16 %v5152_v33  ;;  %v3591_v11 = vunpack.i.h.bf16 %v5128_v34 }
 0x150   : > { %v3689_v46 = vpop.permute.xlu0 %3688  ;;  %v3590_v13 = vunpack.i.l.bf16 %v5128_v34  ;;  %v953_v33 = vsel %vm478_vm0, %v5725_v19, %v3631_v56  ;;  %v3661_v41 = vunpack.i.h.bf16 %v5154_v62  ;;  %v3660_v38 = vunpack.i.l.bf16 %v5154_v62 }
 0x151   : > { %v3691_v17 = vunpack.i.h.bf16 %v3689_v46  ;;  %v3690_v60 = vunpack.i.l.bf16 %v3689_v46  ;;  %v3681_v46 = vunpack.i.h.bf16 %v5178_v31  ;;  %v479_v55 = vsel %vm478_vm0, %v5726_v10, %v3630_v26 }
 0x152   : > { %v5182_v36 = vpop.permute.xlu1 %3683  ;;  %v3665_v34 = vunpack.i.l.bf16 %v5164_v49  ;;  %v3676_v62 = vunpack.i.h.bf16 %v5180_v48  ;;  %v3671_v19 = vunpack.i.h.bf16 %v5170_v54 }
 0x153   : > { %v736_v6 = vsel %vm490_vm6, %v735_v20, %v3690_v60  ;;  %v1180_v22 = vsel %vm490_vm6, %v1179_v8, %v3691_v17  ;;  %v964_v31 = vsel %vm486_vm4, %v963_v14, %v3681_v46  ;;  %v3686_v3 = vunpack.i.h.bf16 %v5182_v36 }
 0x154   : > { %v5184_v61 = vpop.permute.xlu0 %3698  ;;  %v2334_v30 = vrot.slane %v736_v6, 4  ;;  %v2340_v45 = vrot.slane %v1180_v22, 4  ;;  %v3685_v46 = vunpack.i.l.bf16 %v5182_v36  ;;  %v954_v8 = vsel %vm480_vm1, %v953_v33, %v3591_v11 }
 0x155   : > { %v481_v6 = vsel %vm480_vm1, %v479_v55, %v3590_v13  ;;  %v3675_v22 = vunpack.i.l.bf16 %v5180_v48  ;;  %v3670_v33 = vunpack.i.l.bf16 %v5170_v54 }
 0x156   : > { %v5186_v44 = vpop.permute.xlu1 %3693  ;;  %v483_v48 = vsel %vm482_vm2, %v481_v6, %v3660_v38  ;;  %v3701_v38 = vunpack.i.h.bf16 %v5184_v61 }
 0x158   : > { %v5194_v0 = vpop.permute.xlu0 %3708 }
 0x159   : > { %v3711_v14 = vunpack.i.h.bf16 %v5194_v0 }
 0x15a   : > { %v5198_v4 = vpop.permute.xlu1 %3703 }
 0x15b   : > { %v3706_v54 = vunpack.i.h.bf16 %v5198_v4 }
 0x15c   : > { %v5202_v37 = vpop.permute.xlu0 %3718 }
 0x15d   : > { %v3720_v20 = vunpack.i.l.bf16 %v5202_v37 }
 0x15e   : > { %v3714_v7 = vpop.permute.xlu1 %3713 }
 0x15f   : > { %v3716_v42 = vunpack.i.h.bf16 %v3714_v7  ;;  %v3715_v2 = vunpack.i.l.bf16 %v3714_v7  ;;  %v496_v7 = vsel %vm486_vm4, %v495_v25, %v3680_v27  ;;  %v727_v25 = vsel %vm486_vm4, %v5162_v59, %v3665_v34 }
 0x160   : > { %v5214_v40 = vpop.permute.xlu0 %3728  ;;  %v3705_v34 = vunpack.i.l.bf16 %v5198_v4 }
 0x161   : > { %v497_v35 = vsel %vm488_vm5, %v496_v7, %v3715_v2  ;;  %v965_v53 = vsel %vm488_vm5, %v964_v31, %v3716_v42  ;;  %v3666_v42 = vunpack.i.h.bf16 %v5164_v49  ;;  %v3721_v2 = vunpack.i.h.bf16 %v5202_v37 }
 0x162   : > { %v5224_v57 = vpop.permute.xlu1 %3723  ;;  %v3710_v37 = vunpack.i.l.bf16 %v5194_v0  ;;  %v3730_v6 = vunpack.i.l.bf16 %v5214_v40 }
 0x163   : > { %v1171_v49 = vsel %vm486_vm4, %v5159_v58, %v3666_v42  ;;  %v3695_v42 = vunpack.i.l.bf16 %v5186_v44 }
 0x164   : > { %v5232_v16 = vpop.permute.xlu0 %3738  ;;  %v1172_v31 = vsel %vm488_vm5, %v1171_v49, %v3686_v3  ;;  %v3700_v3 = vunpack.i.l.bf16 %v5184_v61  ;;  %v3726_v49 = vunpack.i.h.bf16 %v5224_v57 }
 0x165   : > { %v1173_v58 = vsel %vm490_vm6, %v1172_v31, %v3721_v2 }
 0x166   : > { %v5238_v51 = vpop.permute.xlu1 %3733 }
 0x168   : > { %v3749_v47 = vpop.permute.xlu0 %3748 }
 0x169   : > { %v3751_v9 = vunpack.i.h.bf16 %v3749_v47  ;;  %v3750_v5 = vunpack.i.l.bf16 %v3749_v47  ;;  %v728_v47 = vsel %vm488_vm5, %v727_v25, %v3685_v46  ;;  %v3696_v46 = vunpack.i.h.bf16 %v5186_v44  ;;  %v5728_v25 = vld [vmem:[#allocation22_spill] sm:$0xff] }
 0x16a   : > { %v3744_v12 = vpop.permute.xlu1 %3743  ;;  %v729_v59 = vsel %vm490_vm6, %v728_v47, %v3720_v20  ;;  %v1635_v61 = vsel %vm478_vm0, %v5728_v25, %v3670_v33  ;;  %v3725_v44 = vunpack.i.l.bf16 %v5224_v57  ;;  %v5729_v47 = vld [vmem:[#allocation25_spill] sm:$0xff]  ;;  %v3740_v57 = vunpack.i.l.bf16 %v5232_v16 }
 0x16b   : > { %v498_v15 = vsel %vm490_vm6, %v497_v35, %v3750_v5  ;;  %v966_v1 = vsel %vm490_vm6, %v965_v53, %v3751_v9  ;;  %v3746_v7 = vunpack.i.h.bf16 %v3744_v12  ;;  %v3745_v9 = vunpack.i.l.bf16 %v3744_v12 }
 0x16c   : > { %v5254_v18 = vpop.permute.xlu0 %3758  ;;  %v2357_v21 = vsel %vm2355_vm7, %v498_v15, %v2334_v30  ;;  %v2359_v52 = vsel %vm2355_vm7, %v966_v1, %v2340_v45  ;;  %v955_v35 = vsel %vm482_vm2, %v954_v8, %v3661_v41  ;;  %v485_v53 = vsel %vm484_vm3, %v483_v48, %v3675_v22 }
 0x16d   : > { %v2365_v60 = vpack.c.bf16 %v2359_v52, %v2357_v21  ;;  %v956_v0 = vsel %vm484_vm3, %v955_v35, %v3676_v62  ;;  %v487_v45 = vsel %vm486_vm4, %v485_v53, %v3710_v37  ;;  %v2333_v15 = vrot.slane %v729_v59, 4  ;;  %v5727_v62 = vld [vmem:[#allocation23_spill] sm:$0xff] }
 0x16e   : > { %v5258_v17 = vpop.permute.xlu1 %3753  ;;  %v957_v56 = vsel %vm486_vm4, %v956_v0, %v3711_v14  ;;  %v2339_v1 = vrot.slane %v1173_v58, 4  ;;  %v489_v21 = vsel %vm488_vm5, %v487_v45, %v3745_v9  ;;  %v3731_v8 = vunpack.i.h.bf16 %v5214_v40 }
 0x16f   : > { %2388 = vmatprep.subr.bf16.mxu0 %v2365_v60  ;;  %v958_v52 = vsel %vm488_vm5, %v957_v56, %v3746_v7  ;;  %v2087_v22 = vsel %vm478_vm0, %v5727_v62, %v3671_v19  ;;  %v1636_v4 = vsel %vm480_vm1, %v1635_v61, %v3700_v3  ;;  %v1856_v40 = vsel %vm478_vm0, %v4790_v23, %v3696_v46 }
 0x170   : > { %v5270_v27 = vpop.permute.xlu0 %3768  ;;  %v2088_v37 = vsel %vm480_vm1, %v2087_v22, %v3701_v38  ;;  %v1412_v31 = vsel %vm478_vm0, %v5729_v47, %v3695_v42  ;;  %v1644_v7 = vsel %vm482_vm2, %v5173_v50, %v3705_v34  ;;  %v3741_v9 = vunpack.i.h.bf16 %v5232_v16 }
 0x171   : > { %v2096_v35 = vsel %vm482_vm2, %v5176_v63, %v3706_v54  ;;  %v1857_v59 = vsel %vm480_vm1, %v1856_v40, %v3731_v8  ;;  %v1413_v58 = vsel %vm480_vm1, %v1412_v31, %v3730_v6  ;;  %v3735_v23 = vunpack.i.l.bf16 %v5238_v51 }
 0x172   : > { %v5280_v36 = vpop.permute.xlu1 %3763  ;;  %v1849_v53 = vsel %vm478_vm0, %v4877_v39, %v3726_v49  ;;  %v1405_v50 = vsel %vm478_vm0, %v4872_v43, %v3725_v44  ;;  %v3736_v0 = vunpack.i.h.bf16 %v5238_v51  ;;  %v3760_v16 = vunpack.i.l.bf16 %v5254_v18 }
 0x173   : > { %v3761_v63 = vunpack.i.h.bf16 %v5254_v18  ;;  %v3756_v45 = vunpack.i.h.bf16 %v5258_v17  ;;  %v3755_v56 = vunpack.i.l.bf16 %v5258_v17  ;;  %v2097_v39 = vsel %vm484_vm3, %v2096_v35, %v3741_v9 }
 0x174   : > { %v5290_v5 = vpop.permute.xlu0 %3778  ;;  %v3771_v43 = vunpack.i.h.bf16 %v5270_v27  ;;  %v3765_v51 = vunpack.i.l.bf16 %v5280_v36  ;;  %v2089_v17 = vsel %vm482_vm2, %v2088_v37, %v3736_v0 }
 0x175   : > { %v3781_v18 = vunpack.i.h.bf16 %v5290_v5  ;;  %v1858_v33 = vsel %vm482_vm2, %v1857_v59, %v3761_v63 }
 0x176   : > { %v3774_v30 = vpop.permute.xlu1 %3773  ;;  %v2098_v38 = vsel %vm486_vm4, %v2097_v39, %v3771_v43 }
 0x177   : > { %v3776_v12 = vunpack.i.h.bf16 %v3774_v30  ;;  %v3775_v26 = vunpack.i.l.bf16 %v3774_v30 }
 0x178   : > { %v5302_v60 = vpop.permute.xlu0 %3788 }
 0x179   : > { %v491_v11 = vsel %vm490_vm6, %v489_v21, %v3775_v26  ;;  %v959_v13 = vsel %vm490_vm6, %v958_v52, %v3776_v12  ;;  %v3770_v12 = vunpack.i.l.bf16 %v5270_v27  ;;  %v1645_v26 = vsel %vm484_vm3, %v1644_v7, %v3740_v57 }
 0x17a   : > { %v5308_v10 = vpop.permute.xlu1 %3783  ;;  %v2356_v55 = vsel %vm2355_vm7, %v491_v11, %v2333_v15  ;;  %v2358_v41 = vsel %vm2355_vm7, %v959_v13, %v2339_v1  ;;  %v1637_v1 = vsel %vm482_vm2, %v1636_v4, %v3735_v23  ;;  %v3766_v21 = vunpack.i.h.bf16 %v5280_v36 }
 0x17b   : > { %v2364_v20 = vpack.c.bf16 %v2358_v41, %v2356_v55  ;;  %v3780_v52 = vunpack.i.l.bf16 %v5290_v5  ;;  %v1414_v11 = vsel %vm482_vm2, %v1413_v58, %v3760_v16  ;;  %v3791_v13 = vunpack.i.h.bf16 %v5302_v60 }
 0x17c   : > { %v5317_v2 = vpop.permute.xlu0 %3798  ;;  %v3790_v19 = vunpack.i.l.bf16 %v5302_v60  ;;  %v1406_v55 = vsel %vm480_vm1, %v1405_v50, %v3755_v56  ;;  %v1850_v41 = vsel %vm480_vm1, %v1849_v53, %v3756_v45  ;;  %v1646_v36 = vsel %vm486_vm4, %v1645_v26, %v3770_v12 }
 0x17d   : > { %2389 = vmatpush1.bf16.msra.mxu0 %v2364_v20  ;;  %v1638_v5 = vsel %vm484_vm3, %v1637_v1, %v3765_v51  ;;  %v3786_v3 = vunpack.i.h.bf16 %v5308_v10  ;;  %v3785_v46 = vunpack.i.l.bf16 %v5308_v10  ;;  %v2090_v60 = vsel %vm484_vm3, %v2089_v17, %v3766_v21 }
 0x17e   : > { %v5328_v14 = vpop.permute.xlu1 %3793  ;;  %v1851_v34 = vsel %vm482_vm2, %v1850_v41, %v3781_v18  ;;  %v1407_v20 = vsel %vm482_vm2, %v1406_v55, %v3780_v52  ;;  %v3800_v54 = vunpack.i.l.bf16 %v5317_v2  ;;  %v1639_v8 = vsel %vm486_vm4, %v1638_v5, %v3790_v19 }
 0x17f   : > { %v2091_v6 = vsel %vm486_vm4, %v2090_v60, %v3791_v13  ;;  %v3801_v62 = vunpack.i.h.bf16 %v5317_v2  ;;  %v3795_v22 = vunpack.i.l.bf16 %v5328_v14  ;;  %v3796_v10 = vunpack.i.h.bf16 %v5328_v14 }
 0x180   : > { %v5340_v48 = vpop.permute.xlu0 %3808  ;;  %v1415_v37 = vsel %vm484_vm3, %v1414_v11, %v3785_v46  ;;  %v1859_v4 = vsel %vm484_vm3, %v1858_v33, %v3786_v3  ;;  %v1408_v2 = vsel %vm484_vm3, %v1407_v20, %v3800_v54 }
 0x181   : > { %v3811_v61 = vunpack.i.h.bf16 %v5340_v48  ;;  %v3810_v49 = vunpack.i.l.bf16 %v5340_v48  ;;  %v1852_v14 = vsel %vm484_vm3, %v1851_v34, %v3801_v62  ;;  %v1647_v35 = vsel %vm488_vm5, %v1646_v36, %v3795_v22 }
 0x182   : > { %v5353_v30 = vpop.permute.xlu1 %3803  ;;  %v2099_v23 = vsel %vm488_vm5, %v2098_v38, %v3796_v10 }
 0x183   : > { %v3805_v40 = vunpack.i.l.bf16 %v5353_v30  ;;  %v3806_v7 = vunpack.i.h.bf16 %v5353_v30  ;;  %v1640_v53 = vsel %vm488_vm5, %v1639_v8, %v3810_v49  ;;  %v2092_v50 = vsel %vm488_vm5, %v2091_v6, %v3811_v61 }
 0x184   : > { %v3819_v15 = vpop.permute.xlu0 %3818 }
 0x185   : > { %v3820_v9 = vunpack.i.l.bf16 %v3819_v15  ;;  %v3821_v48 = vunpack.i.h.bf16 %v3819_v15  ;;  %v1416_v16 = vsel %vm486_vm4, %v1415_v37, %v3805_v40  ;;  %v1860_v12 = vsel %vm486_vm4, %v1859_v4, %v3806_v7 }
 0x186   : > { %v3814_v27 = vpop.permute.xlu1 %3813 }
 0x187   : > { %v3815_v44 = vunpack.i.l.bf16 %v3814_v27  ;;  %v3816_v47 = vunpack.i.h.bf16 %v3814_v27  ;;  %v1409_v26 = vsel %vm486_vm4, %v1408_v2, %v3820_v9  ;;  %v1853_v51 = vsel %vm486_vm4, %v1852_v14, %v3821_v48 }
 0x188   : > { %v3829_v42 = vpop.permute.xlu0 %3828 }
 0x189   : > { %v3830_v57 = vunpack.i.l.bf16 %v3829_v42  ;;  %v3831_v59 = vunpack.i.h.bf16 %v3829_v42  ;;  %v1648_v0 = vsel %vm490_vm6, %v1647_v35, %v3815_v44  ;;  %v2100_v30 = vsel %vm490_vm6, %v2099_v23, %v3816_v47 }
 0x18a   : > { %v3824_v25 = vpop.permute.xlu1 %3823  ;;  %v2346_v15 = vrot.slane %v1648_v0, 4  ;;  %v2352_v52 = vrot.slane %v2100_v30, 4 }
 0x18b   : > { %v3826_v63 = vunpack.i.h.bf16 %v3824_v25  ;;  %v3825_v45 = vunpack.i.l.bf16 %v3824_v25  ;;  %v1641_v39 = vsel %vm490_vm6, %v1640_v53, %v3830_v57  ;;  %v2093_v1 = vsel %vm490_vm6, %v2092_v50, %v3831_v59 }
 0x18c   : > { %v3839_v31 = vpop.permute.xlu0 %3838  ;;  %v2345_v19 = vrot.slane %v1641_v39, 4  ;;  %v2351_v36 = vrot.slane %v2093_v1, 4  ;;  %v2434_v1 = vld [vmem:[%s5650_s4] sm:$0x3f] }
 0x18d   : > { %v3840_v43 = vunpack.i.l.bf16 %v3839_v31  ;;  %v3841_v21 = vunpack.i.h.bf16 %v3839_v31  ;;  %v1417_v27 = vsel %vm488_vm5, %v1416_v16, %v3825_v45  ;;  %v1861_v33 = vsel %vm488_vm5, %v1860_v12, %v3826_v63  ;;  %2437 = vperm.xlu0 %3883, %v2434_v1  }
 0x18e   : > { %v3834_v58 = vpop.permute.xlu1 %3833 }
 0x18f   : > { %v3836_v17 = vunpack.i.h.bf16 %v3834_v58  ;;  %v3835_v55 = vunpack.i.l.bf16 %v3834_v58  ;;  %v1410_v38 = vsel %vm488_vm5, %v1409_v26, %v3840_v43  ;;  %v1854_v46 = vsel %vm488_vm5, %v1853_v51, %v3841_v21 }
 0x190   : > { %v3849_v56 = vpop.permute.xlu0 %3848 }
 0x191   : > { %v3851_v42 = vunpack.i.h.bf16 %v3849_v56  ;;  %v2324_v54 = vsel %vm478_vm0, %v5081_v29, %v3836_v17  ;;  %v3850_v8 = vunpack.i.l.bf16 %v3849_v56  ;;  %v2317_v22 = vsel %vm478_vm0, %v5084_v32, %v3835_v55 }
 0x192   : > { %v3844_v18 = vpop.permute.xlu1 %3843 }
 0x193   : > { %v3846_v11 = vunpack.i.h.bf16 %v3844_v18  ;;  %v3845_v13 = vunpack.i.l.bf16 %v3844_v18  ;;  %v2325_v4 = vsel %vm480_vm1, %v2324_v54, %v3851_v42  ;;  %v2318_v31 = vsel %vm480_vm1, %v2317_v22, %v3850_v8  ;;  %v5473_v54 = vld [vmem:[%s5651_s5] sm:$0xff]  }
 0x194   : > { %v3859_v41 = vpop.permute.xlu0 %3858 }
 0x195   : > { %v1418_v5 = vsel %vm490_vm6, %v1417_v27, %v3845_v13  ;;  %v1862_v3 = vsel %vm490_vm6, %v1861_v33, %v3846_v11  ;;  %v3861_v25 = vunpack.i.h.bf16 %v3859_v41  ;;  %v3860_v10 = vunpack.i.l.bf16 %v3859_v41 }
 0x196   : > { %v3854_v60 = vpop.permute.xlu1 %3853  ;;  %v2361_v34 = vsel %vm2355_vm7, %v1418_v5, %v2346_v15  ;;  %v2363_v20 = vsel %vm2355_vm7, %v1862_v3, %v2352_v52  ;;  %v2370_v15 = vld [vmem:[%s5647_s1] sm:$0xf] }
 0x197   : > { %v3856_v6 = vunpack.i.h.bf16 %v3854_v60  ;;  %v3855_v62 = vunpack.i.l.bf16 %v3854_v60  ;;  %v2367_v49 = vpack.c.bf16 %v2363_v20, %v2361_v34  ;;  %v2319_v9 = vsel %vm482_vm2, %v2318_v31, %v3860_v10 }
 0x198   : > { %v3869_v61 = vpop.permute.xlu0 %3868  ;;  %v2326_v57 = vsel %vm482_vm2, %v2325_v4, %v3861_v25 }
 0x199   : > { %v1411_v44 = vsel %vm490_vm6, %v1410_v38, %v3855_v62  ;;  %v1855_v37 = vsel %vm490_vm6, %v1854_v46, %v3856_v6  ;;  %2390 = vmatprep.subr.bf16.mxu0 %v2367_v49  ;;  %v3871_v59 = vunpack.i.h.bf16 %v3869_v61  ;;  %v3870_v58 = vunpack.i.l.bf16 %v3869_v61  ;;  %v2431_v38 = vld [vmem:[%s5649_s3] sm:$0x7] }
 0x19a   : > { %v3864_v40 = vpop.permute.xlu1 %3863  ;;  %v2360_v29 = vsel %vm2355_vm7, %v1411_v44, %v2345_v19  ;;  %v2362_v47 = vsel %vm2355_vm7, %v1855_v37, %v2351_v36 }
 0x19b   : > { %v3866_v2 = vunpack.i.h.bf16 %v3864_v40  ;;  %v3865_v32 = vunpack.i.l.bf16 %v3864_v40  ;;  %v2366_v7 = vpack.c.bf16 %v2362_v47, %v2360_v29 }
 0x19c   : > { %v3879_v48 = vpop.permute.xlu0 %3878 }
 0x19d   : > { %v2320_v14 = vsel %vm484_vm3, %v2319_v9, %v3865_v32  ;;  %v2327_v35 = vsel %vm484_vm3, %v2326_v57, %v3866_v2  ;;  %2391 = vmatpush1.bf16.msra.mxu0 %v2366_v7  ;;  %v3881_v0 = vunpack.i.h.bf16 %v3879_v48  ;;  %v3880_v16 = vunpack.i.l.bf16 %v3879_v48 }
 0x19e   : > { %v3874_v23 = vpop.permute.xlu1 %3873  ;;  %v2328_v30 = vsel %vm486_vm4, %v2327_v35, %v3871_v59  ;;  %v2321_v63 = vsel %vm486_vm4, %v2320_v14, %v3870_v58 }
 0x19f   : > { %v3876_v53 = vunpack.i.h.bf16 %v3874_v23  ;;  %v3875_v50 = vunpack.i.l.bf16 %v3874_v23 }
 0x1a1   : > { %v2329_v45 = vsel %vm488_vm5, %v2328_v30, %v3876_v53  ;;  %v2322_v56 = vsel %vm488_vm5, %v2321_v63, %v3875_v50 }
 0x1a2   : > { %v2330_v12 = vsel %vm490_vm6, %v2329_v45, %v3881_v0  ;;  %v2323_v26 = vsel %vm490_vm6, %v2322_v56, %v3880_v16 }
 0x1a3   : > { %v2369_v39 = vpack.c.bf16 %v2330_v12, %v2330_v12  ;;  %v2368_v43 = vpack.c.bf16 %v2323_v26, %v2323_v26 }
 0x1a5   : > { %3381 = vmatprep.subr.msk.bf16.mxu0 %vm2381_vm8, %v2369_v39  ;;  %v2383_v51 = vsel %vm2381_vm8, %v2368_v43, 0 }
 0x1a6   : > { %2393 = vmatpush1.bf16.msra.mxu0 %v2383_v51 }
 0x1a9   : > { %3382 = vmatmul.mubr.msk.bf16.vlgmr.msra.gmra.mrb[0].mxu0 %vm2377_vm9, %v2370_v15 }
 0x1aa   : > { %3454 = vmatprep.mubr.msk.bf16.mxu0 %vm478_vm0, %v5473_v54 }
 0x1af   : > { %v2375_v21 = vpop.permute.xlu1 %2374 }
 0x20c   : > { %v2438_v5 = vpop.permute.xlu0 %2437 }
 0x27c   : > { %v2422_v18 = vpop.f32.mrb[0].mxu0 }
 0x27d   : > { %v2423_v52 = vadd.f32 %v2422_v18, %v2375_v21  ;;  %v2424_v17 = vpop.f32.mrb[1].mxu0 }
 0x27e   : > { %v2425_v11 = vadd.f32 %v2424_v17, %v2375_v21  ;;  %v2426_v13 = vpop.f32.mrb[2].mxu0 }
 0x27f   : > { %v2429_v19 = vmax.f32 %v2423_v52, 0.0  ;;  %v2427_v27 = vpop.f32.mrb[3].mxu0 }
 0x280   : > { %v2430_v33 = vmax.f32 %v2425_v11, 0.0 }
 0x281   : > { %v2432_v55 = vpack.c.bf16 %v2429_v19, %v2429_v19 }
 0x282   : > { %v2433_v41 = vpack.c.bf16 %v2430_v33, %v2430_v33 }
 0x283   : > { %v2445_v36 = vsel %vm2355_vm7, %v2432_v55, 0 }
 0x284   : > { %3383 = vmatprep.subr.msk.bf16.mxu1 %vm2355_vm7, %v2433_v41 }
 0x285   : > { %2451 = vmatpush1.bf16.msra.mxu1 %v2445_v36 }
 0x288   : > { %3384 = vmatmul.mubr.msk.bf16.vlgmr.msra.gmra.mrb[0].mxu1 %vm2440_vm10, %v2431_v38 }
 0x289   : > { %3448 = vmatprep.mubr.msk.bf16.mxu1 %vm478_vm0, %v5473_v54 }
 0x35b   : > { %v2484_v3 = vpop.f32.mrb[0].mxu1 }
 0x35c   : > { %v2485_v46 = vadd.f32 %v2484_v3, %v2438_v5  ;;  %v2486_v42 = vpop.f32.mrb[1].mxu1 }
 0x35d   : > { %v2488_v60 = vpop.f32.mrb[2].mxu1  ;;  %v5453_v20 = vadd.f32 %v2486_v42, %v2438_v5 }
 0x35e   : > { %v2489_v34 = vpop.f32.mrb[3].mxu1  ;;  %2498 = vrot.lane.b32.xlu0 %v2485_v46, %s3985_s8  ;;  %2492 = vrot.lane.b32.xlu1 %v2485_v46, %s3986_s9 }
 0x362   : > { %2504 = vrot.lane.b32.xlu0 %v2485_v46, %s3983_s23  ;;  %2495 = vrot.lane.b32.xlu1 %v2485_v46, %s3984_s29 }
 0x366   : > { %2510 = vrot.lane.b32.xlu0 %v2485_v46, %s3982_s22  ;;  %2501 = vrot.lane.b32.xlu1 %v2485_v46, %s3981_s21 }
 0x36a   : > { %2517 = vrot.lane.b32.xlu0 %v5453_v20, %s3984_s29  ;;  %2507 = vrot.lane.b32.xlu1 %v2485_v46, %s3979_s20 }
 0x36e   : > { %2523 = vrot.lane.b32.xlu0 %v5453_v20, %s3981_s21  ;;  %2514 = vrot.lane.b32.xlu1 %v5453_v20, %s3986_s9 }
 0x372   : > { %2529 = vrot.lane.b32.xlu0 %v5453_v20, %s3979_s20  ;;  %2520 = vrot.lane.b32.xlu1 %v5453_v20, %s3985_s8  ;;  %s269_s8 = sand.u32 1, %s3965_s25   ;;  %s3915_s20 = sshll.u32 %s3988_s14, 4  ;;  %s3916_s20 = int_to_ptr.vmem [resolvable:$false] %s3915_s20 }
 0x373   : > { %s3510_s9 = smul.u32 192, %s269_s8  ;;  %s5605_s28 = scalar_lea.sflag [#allocation3], %s269_s8 }
 0x374   : > { %s3917_s21 = scalar_lea.vmem %s3916_s20, 6144 }
 0x375   : > { %s5544_s15 = scalar_lea.vmem [#allocation2], %s3510_s9 }
 0x376   : > { %2526 = vrot.lane.b32.xlu1 %v5453_v20, %s3983_s23  ;;  %s3314_s17 = sshll.u32 %s5544_s15, 4  ;;  %s5590_s17 = int_to_ptr.vmem [resolvable:$true] %s3314_s17 }
 0x377   : > { %s3911_s29 = scalar_lea.vmem %s5590_s17, 3072  ;;  %p3918_p0 = scmp.lt.s32.totalorder %s5590_s17, %s3916_s20 }
 0x378   : > { %p3912_p11 = scmp.ne.s32.totalorder %s5590_s17, %s3911_s29  ;;  %p3919_p1 = scmp.lt.s32.totalorder %s3917_s21, %s3911_s29 }
 0x37a   : > { %2532 = vrot.lane.b32.xlu1 %v5453_v20, %s3982_s22  ;;  %p3913_p12 = pnand %p3912_p11, %p4069_p5  ;;  %p3920_p2 = por %p3919_p1, %p3918_p0 }
 0x37c   : > { %p3914_p13 = pneg %p3913_p12 }
 0x37e   : > { %p3921_p3 = pnand %p3920_p2, %p3914_p13 }
 0x3d0   : > { %v2499_v8 = vpop.permute.xlu0 %2498  ;;  %v2493_v6 = vpop.permute.xlu1 %2492 }
 0x3d1   : > { %v2551_v47 = vcombine.low %v2493_v6, %v2499_v8  ;;  %v2552_v2 = vcombine.high %v2493_v6, %v2499_v8 }
 0x3d3   : > { %v2559_v48 = vrot.slane %v2551_v47, %v4150_v28  ;;  %v2566_v16 = vrot.slane %v2552_v2, %v4150_v28 }
 0x3d4   : > { %v2505_v62 = vpop.permute.xlu0 %2504  ;;  %v2496_v22 = vpop.permute.xlu1 %2495 }
 0x3d5   : > { %v2535_v4 = vcombine.low %v2485_v46, %v2496_v22  ;;  %v2536_v32 = vcombine.high %v2485_v46, %v2496_v22 }
 0x3d7   : > { %v2543_v57 = vrot.slane %v2535_v4, %v4150_v28  ;;  %v2550_v30 = vrot.slane %v2536_v32, %v4150_v28 }
 0x3d8   : > { %v2511_v25 = vpop.permute.xlu0 %2510  ;;  %v2502_v10 = vpop.permute.xlu1 %2501 }
 0x3d9   : > { %v2583_v31 = vcombine.low %v2505_v62, %v2511_v25  ;;  %v2599_v45 = vcombine.low %v2543_v57, %v2559_v48  ;;  %v2584_v56 = vcombine.high %v2505_v62, %v2511_v25  ;;  %v2600_v33 = vcombine.high %v2543_v57, %v2559_v48 }
 0x3da   : > { %v2615_v38 = vcombine.low %v2550_v30, %v2566_v16 }
 0x3db   : > { %v2591_v23 = vrot.slane %v2583_v31, %v4150_v28  ;;  %v2598_v55 = vrot.slane %v2584_v56, %v4150_v28  ;;  %v2607_v42 = vrot.slane %v2599_v45, %v4366_v24  ;;  %v2614_v22 = vrot.slane %v2600_v33, %v4366_v24 }
 0x3dc   : > { %v2518_v61 = vpop.permute.xlu0 %2517  ;;  %v2508_v49 = vpop.permute.xlu1 %2507 }
 0x3dd   : > { %v2567_v40 = vcombine.low %v2502_v10, %v2508_v49  ;;  %v2653_v59 = vcombine.low %v5453_v20, %v2518_v61  ;;  %v2568_v58 = vcombine.high %v2502_v10, %v2508_v49  ;;  %v2654_v12 = vcombine.high %v5453_v20, %v2518_v61 }
 0x3df   : > { %v2575_v14 = vrot.slane %v2567_v40, %v4150_v28  ;;  %v2661_v43 = vrot.slane %v2653_v59, %v4150_v28  ;;  %v2582_v51 = vrot.slane %v2568_v58, %v4150_v28  ;;  %v2668_v41 = vrot.slane %v2654_v12, %v4150_v28 }
 0x3e0   : > { %v2515_v44 = vpop.permute.xlu1 %2514  ;;  %v2524_v37 = vpop.permute.xlu0 %2523 }
 0x3e1   : > { %v2623_v26 = vcombine.low %v2575_v14, %v2591_v23  ;;  %v2624_v21 = vcombine.high %v2575_v14, %v2591_v23  ;;  %v2639_v34 = vcombine.low %v2582_v51, %v2598_v55 }
 0x3e3   : > { %v2631_v36 = vrot.slane %v2623_v26, %v4366_v24  ;;  %v2638_v60 = vrot.slane %v2624_v21, %v4366_v24  ;;  %v2646_v40 = vrot.slane %v2639_v34, %v4366_v24 }
 0x3e4   : > { %v2521_v29 = vpop.permute.xlu1 %2520  ;;  %v2530_v7 = vpop.permute.xlu0 %2529 }
 0x3e5   : > { %v2669_v9 = vcombine.low %v2515_v44, %v2521_v29  ;;  %v2685_v53 = vcombine.low %v2524_v37, %v2530_v7  ;;  %v2686_v50 = vcombine.high %v2524_v37, %v2530_v7  ;;  %v2670_v0 = vcombine.high %v2515_v44, %v2521_v29 }
 0x3e6   : > { %v2647_v10 = vcombine.low %v2607_v42, %v2631_v36  ;;  %v2648_v61 = vcombine.high %v2607_v42, %v2631_v36  ;;  %v2649_v2 = vcombine.low %v2614_v22, %v2638_v60  ;;  %v2650_v32 = vcombine.high %v2614_v22, %v2638_v60 }
 0x3e7   : > { %v2677_v63 = vrot.slane %v2669_v9, %v4150_v28  ;;  %v2693_v18 = vrot.slane %v2685_v53, %v4150_v28  ;;  %v2700_v52 = vrot.slane %v2686_v50, %v4150_v28  ;;  %v2684_v17 = vrot.slane %v2670_v0, %v4150_v28  ;;  %v3910_v53 = vld [vmem:[%s5652_s6] sm:$0xff]  }
 0x3e8   : > { %v2527_v35 = vpop.permute.xlu1 %2526  ;;  %v2622_v7 = vrot.slane %v2615_v38, %v4366_v24 }
 0x3e9   : > { %v2717_v11 = vcombine.low %v2661_v43, %v2677_v63  ;;  %v2718_v13 = vcombine.high %v2661_v43, %v2677_v63  ;;  %v2733_v20 = vcombine.low %v2668_v41, %v2684_v17 }
 0x3ea   : > { %v2651_v59 = vcombine.low %v2622_v7, %v2646_v40  ;;  %v2652_v58 = vcombine.high %v2622_v7, %v2646_v40 }
 0x3eb   : > { %v2725_v8 = vrot.slane %v2717_v11, %v4366_v24  ;;  %v2732_v6 = vrot.slane %v2718_v13, %v4366_v24  ;;  %v2740_v29 = vrot.slane %v2733_v20, %v4366_v24 }
 0x3ec   : > { %v2533_v39 = vpop.permute.xlu1 %2532 }
 0x3ed   : > { %v2701_v15 = vcombine.low %v2527_v35, %v2533_v39  ;;  %v2702_v1 = vcombine.high %v2527_v35, %v2533_v39  ;;  %v3909_v35 = vld [vmem:[%s5651_s5 + $0x8] sm:$0xff]  }
 0x3ef   : > { %v2709_v19 = vrot.slane %v2701_v15, %v4150_v28  ;;  %v2716_v27 = vrot.slane %v2702_v1, %v4150_v28 }
 0x3f1   : > { %v2741_v5 = vcombine.low %v2693_v18, %v2709_v19  ;;  %v2742_v3 = vcombine.high %v2693_v18, %v2709_v19  ;;  %v2757_v46 = vcombine.low %v2700_v52, %v2716_v27 }
 0x3f3   : > { %v2749_v62 = vrot.slane %v2741_v5, %v4366_v24  ;;  %v2756_v28 = vrot.slane %v2742_v3, %v4366_v24  ;;  %v2764_v25 = vrot.slane %v2757_v46, %v4366_v24 }
 0x3f5   : > { %v2765_v49 = vcombine.low %v2725_v8, %v2749_v62  ;;  %v2766_v44 = vcombine.high %v2725_v8, %v2749_v62  ;;  %v2767_v37 = vcombine.low %v2732_v6, %v2756_v28  ;;  %v2768_v4 = vcombine.high %v2732_v6, %v2756_v28 }
 0x3f6   : > { %v2769_v9 = vcombine.low %v2740_v29, %v2764_v25  ;;  %v2770_v48 = vcombine.high %v2740_v29, %v2764_v25 }
 0x3f7   : > { %v2775_v47 = vpack.c.bf16 %v2765_v49, %v2647_v10  ;;  %v2776_v31 = vpack.c.bf16 %v2766_v44, %v2648_v61  ;;  %v2777_v57 = vpack.c.bf16 %v2767_v37, %v2649_v2  ;;  %v2778_v14 = vpack.c.bf16 %v2768_v4, %v2650_v32 }
 0x3f8   : > { %v2779_v24 = vpack.c.bf16 %v2769_v9, %v2651_v59  ;;  %v2780_v23 = vpack.c.bf16 %v2770_v48, %v2652_v58 }
 0x3f9   : > { %3446 = vmatprep.subr.bf16.mxu1 %v2775_v47  ;;  %3452 = vmatprep.subr.bf16.mxu0 %v2776_v31 }
 0x3fa   : > { %3447 = vmatpush3.bf16.msra.mxu1 %v2775_v47  ;;  %3453 = vmatpush3.bf16.msra.mxu0 %v2776_v31 }
 0x3fb   : > { %3458 = vmatprep.subr.bf16.mxu1 %v2777_v57  ;;  %3464 = vmatprep.subr.bf16.mxu0 %v2778_v14 }
 0x3fd   : > { %3449 = vmatmul.mubr.msk.bf16.vlgmr.msra.gmra.mrb[4].mxu1 %vm478_vm0, %v3909_v35  ;;  %3455 = vmatmul.mubr.msk.bf16.vlgmr.msra.gmra.mrb[4].mxu0 %vm478_vm0, %v3909_v35 }
 0x3fe   : > { %3459 = vmatpush3.bf16.msra.mxu1 %v2777_v57  ;;  %3465 = vmatpush3.bf16.msra.mxu0 %v2778_v14 }
 0x3ff   : > { %3470 = vmatprep.subr.bf16.mxu1 %v2779_v24  ;;  %3476 = vmatprep.subr.bf16.mxu0 %v2780_v23 }
 0x400   : > { %3460 = vmatprep.mubr.msk.bf16.mxu1 %vm478_vm0, %v5473_v54  ;;  %3466 = vmatprep.mubr.msk.bf16.mxu0 %vm478_vm0, %v5473_v54 }
 0x405   : > { %3461 = vmatmul.mubr.msk.bf16.vlgmr.msra.gmra.mrb[8].mxu1 %vm478_vm0, %v3909_v35  ;;  %3467 = vmatmul.mubr.msk.bf16.vlgmr.msra.gmra.mrb[8].mxu0 %vm478_vm0, %v3909_v35 }
 0x406   : > { %3471 = vmatpush3.bf16.msra.mxu1 %v2779_v24  ;;  %3477 = vmatpush3.bf16.msra.mxu0 %v2780_v23 }
 0x407   : > { %3472 = vmatprep.mubr.msk.bf16.mxu1 %vm478_vm0, %v5473_v54  ;;  %3478 = vmatprep.mubr.msk.bf16.mxu0 %vm478_vm0, %v5473_v54 }
 0x408   : > { %3482 = vmatprep.subr.bf16.mxu0 %v3910_v53  ;;  %3508 = vmatprep.subr.bf16.mxu1 %v3910_v53 }
 0x40d   : > { %3473 = vmatmul.mubr.msk.bf16.vlgmr.msra.gmra.mrb[12].mxu1 %vm478_vm0, %v3909_v35  ;;  %3479 = vmatmul.mubr.msk.bf16.vlgmr.msra.gmra.mrb[12].mxu0 %vm478_vm0, %v3909_v35 }
 0x40e   : > { %3483 = vmatpush3.bf16.msra.mxu0 %v3910_v53  ;;  %3509 = vmatpush3.bf16.msra.mxu1 %v3910_v53 }
 0x4d0   : > { %v3450_v50 = vpop.f32.mrb[4].mxu1  ;;  %v3456_v0 = vpop.f32.mrb[4].mxu0 }
 0x4d1   : > { %v2831_v16 = vpop.f32.mrb[5].mxu1  ;;  %v2880_v30 = vpop.f32.mrb[5].mxu0 }
 0x4d2   : > { %v3451_v63 = vpop.f32.mrb[6].mxu1  ;;  %v3457_v45 = vpop.f32.mrb[6].mxu0 }
 0x4d3   : > { %v3092_v56 = vpack.c.bf16 %v3451_v63, %v3450_v50  ;;  %v2834_v54 = vpop.f32.mrb[7].mxu1  ;;  %v3094_v12 = vpack.c.bf16 %v3457_v45, %v3456_v0  ;;  %v2883_v26 = vpop.f32.mrb[7].mxu0 }
 0x4d4   : > { %v3091_v39 = vpack.c.bf16 %v2834_v54, %v2831_v16  ;;  %v3093_v43 = vpack.c.bf16 %v2883_v26, %v2880_v30 }
 0x4d6   : > { %3484 = vmatprep.mubr.msk.bf16.mxu0 %vm478_vm0, %v3091_v39 }
 0x4d7   : > { %3485 = vmatmul.mubr.msk.bf16.vlgmr.msra.gmra.mrb[16].mxu0 %vm478_vm0, %v3092_v56 }
 0x4d8   : > { %v3462_v51 = vpop.f32.mrb[8].mxu1  ;;  %3488 = vmatprep.mubr.msk.bf16.mxu0 %vm478_vm0, %v3093_v43  ;;  %v3468_v15 = vpop.f32.mrb[8].mxu0 }
 0x4d9   : > { %v2929_v1 = vpop.f32.mrb[9].mxu1  ;;  %v2978_v21 = vpop.f32.mrb[9].mxu0 }
 0x4da   : > { %v3463_v18 = vpop.f32.mrb[10].mxu1  ;;  %v3469_v52 = vpop.f32.mrb[10].mxu0 }
 0x4db   : > { %v3096_v17 = vpack.c.bf16 %v3463_v18, %v3462_v51  ;;  %v2932_v11 = vpop.f32.mrb[11].mxu1  ;;  %v3098_v13 = vpack.c.bf16 %v3469_v52, %v3468_v15  ;;  %v2981_v19 = vpop.f32.mrb[11].mxu0 }
 0x4dc   : > { %v3095_v27 = vpack.c.bf16 %v2932_v11, %v2929_v1  ;;  %v3097_v33 = vpack.c.bf16 %v2981_v19, %v2978_v21 }
 0x4de   : > { %3492 = vmatprep.mubr.msk.bf16.mxu1 %vm478_vm0, %v3095_v27 }
 0x4df   : > { %3489 = vmatmul.mubr.msk.bf16.gmra.mrb[20].mxu0 %vm478_vm0, %v3094_v12  ;;  %3493 = vmatmul.mubr.msk.bf16.vlgmr.msra.gmra.mrb[16].mxu1 %vm478_vm0, %v3096_v17 }
 0x4e0   : > { %3496 = vmatprep.mubr.msk.bf16.mxu1 %vm478_vm0, %v3097_v33  ;;  %v3474_v55 = vpop.f32.mrb[12].mxu1  ;;  %v3480_v41 = vpop.f32.mrb[12].mxu0 }
 0x4e1   : > { %v3027_v36 = vpop.f32.mrb[13].mxu1  ;;  %v3076_v38 = vpop.f32.mrb[13].mxu0 }
 0x4e2   : > { %v3475_v5 = vpop.f32.mrb[14].mxu1  ;;  %v3481_v3 = vpop.f32.mrb[14].mxu0 }
 0x4e3   : > { %v3100_v46 = vpack.c.bf16 %v3475_v5, %v3474_v55  ;;  %v3030_v42 = vpop.f32.mrb[15].mxu1  ;;  %v3102_v60 = vpack.c.bf16 %v3481_v3, %v3480_v41  ;;  %v3079_v34 = vpop.f32.mrb[15].mxu0 }
 0x4e4   : > { %v3099_v20 = vpack.c.bf16 %v3030_v42, %v3027_v36  ;;  %v3101_v8 = vpack.c.bf16 %v3079_v34, %v3076_v38 }
 0x4e7   : > { %3497 = vmatmul.mubr.msk.bf16.gmra.mrb[20].mxu1 %vm478_vm0, %v3098_v13 }
 0x4e8   : > { %3500 = vmatprep.mubr.msk.bf16.mxu1 %vm478_vm0, %v3099_v20 }
 0x4ef   : > { %3501 = vmatmul.mubr.msk.bf16.gmra.mrb[24].mxu1 %vm478_vm0, %v3100_v46 }
 0x4f0   : > { %3504 = vmatprep.mubr.msk.bf16.mxu1 %vm478_vm0, %v3101_v8 }
 0x4f7   : > { %3505 = vmatmul.mubr.msk.bf16.gmra.mrb[28].mxu1 %vm478_vm0, %v3102_v60 }
 0x5aa   : > { %v3486_v6 = vpop.f32.mrb[16].mxu0 }
 0x5ab   : > { %3278 = vst.msk [vmem:[%s5544_s15 + $0x10] sm:$0xff] %vm480_vm1, %v3486_v6  ;;  %v3181_v62 = vpop.f32.mrb[17].mxu0 }
 0x5ac   : > { %3276 = vst.msk [vmem:[%s5544_s15] sm:$0xff] %vm480_vm1, %v3181_v62  ;;  %v3487_v28 = vpop.f32.mrb[18].mxu0 }
 0x5ad   : > { %3279 = vst.msk [vmem:[%s5544_s15 + $0x18] sm:$0xff] %vm480_vm1, %v3487_v28  ;;  %v3184_v22 = vpop.f32.mrb[19].mxu0 }
 0x5ae   : > { %3277 = vst.msk [vmem:[%s5544_s15 + $0x8] sm:$0xff] %vm480_vm1, %v3184_v22 }
 0x5b2   : > { %v3490_v25 = vpop.f32.mrb[20].mxu0  ;;  %v3494_v10 = vpop.f32.mrb[16].mxu1 }
 0x5b3   : > { %3282 = vst.msk [vmem:[%s5544_s15 + $0x30] sm:$0xff] %vm480_vm1, %v3490_v25  ;;  %3286 = vst.msk [vmem:[%s5544_s15 + $0x50] sm:$0xff] %vm480_vm1, %v3494_v10  ;;  %v3197_v61 = vpop.f32.mrb[21].mxu0  ;;  %v3213_v49 = vpop.f32.mrb[17].mxu1 }
 0x5b4   : > { %3280 = vst.msk [vmem:[%s5544_s15 + $0x20] sm:$0xff] %vm480_vm1, %v3197_v61  ;;  %3284 = vst.msk [vmem:[%s5544_s15 + $0x40] sm:$0xff] %vm480_vm1, %v3213_v49  ;;  %v3491_v44 = vpop.f32.mrb[22].mxu0  ;;  %v3495_v37 = vpop.f32.mrb[18].mxu1 }
 0x5b5   : > { %3283 = vst.msk [vmem:[%s5544_s15 + $0x38] sm:$0xff] %vm480_vm1, %v3491_v44  ;;  %3287 = vst.msk [vmem:[%s5544_s15 + $0x58] sm:$0xff] %vm480_vm1, %v3495_v37  ;;  %v3200_v4 = vpop.f32.mrb[23].mxu0  ;;  %v3216_v40 = vpop.f32.mrb[19].mxu1 }
 0x5b6   : > { %3281 = vst.msk [vmem:[%s5544_s15 + $0x28] sm:$0xff] %vm480_vm1, %v3200_v4  ;;  %3285 = vst.msk [vmem:[%s5544_s15 + $0x48] sm:$0xff] %vm480_vm1, %v3216_v40 }
 0x5ba   : > { %v3498_v29 = vpop.f32.mrb[20].mxu1 }
 0x5bb   : > { %3290 = vst.msk [vmem:[%s5544_s15 + $0x70] sm:$0xff] %vm480_vm1, %v3498_v29  ;;  %v3229_v47 = vpop.f32.mrb[21].mxu1 }
 0x5bc   : > { %3288 = vst.msk [vmem:[%s5544_s15 + $0x60] sm:$0xff] %vm480_vm1, %v3229_v47  ;;  %v3499_v31 = vpop.f32.mrb[22].mxu1 }
 0x5bd   : > { %3291 = vst.msk [vmem:[%s5544_s15 + $0x78] sm:$0xff] %vm480_vm1, %v3499_v31  ;;  %v3232_v2 = vpop.f32.mrb[23].mxu1 }
 0x5be   : > { %3289 = vst.msk [vmem:[%s5544_s15 + $0x68] sm:$0xff] %vm480_vm1, %v3232_v2 }
 0x5c2   : > { %v3502_v32 = vpop.f32.mrb[24].mxu1 }
 0x5c3   : > { %3294 = vst.msk [vmem:[%s5544_s15 + $0x90] sm:$0xff] %vm480_vm1, %v3502_v32  ;;  %v3245_v7 = vpop.f32.mrb[25].mxu1 }
 0x5c4   : > { %3292 = vst.msk [vmem:[%s5544_s15 + $0x80] sm:$0xff] %vm480_vm1, %v3245_v7  ;;  %v3503_v9 = vpop.f32.mrb[26].mxu1 }
 0x5c5   : > { %3295 = vst.msk [vmem:[%s5544_s15 + $0x98] sm:$0xff] %vm480_vm1, %v3503_v9  ;;  %v3248_v57 = vpop.f32.mrb[27].mxu1 }
 0x5c6   : > { %3293 = vst.msk [vmem:[%s5544_s15 + $0x88] sm:$0xff] %vm480_vm1, %v3248_v57 }
 0x5ca   : > { %v3506_v14 = vpop.f32.mrb[28].mxu1 }
 0x5cb   : > { %3298 = vst.msk [vmem:[%s5544_s15 + $0xb0] sm:$0xff] %vm480_vm1, %v3506_v14  ;;  %v3261_v35 = vpop.f32.mrb[29].mxu1 }
 0x5cc   : > { %3296 = vst.msk [vmem:[%s5544_s15 + $0xa0] sm:$0xff] %vm480_vm1, %v3261_v35  ;;  %v3507_v48 = vpop.f32.mrb[30].mxu1 }
 0x5cd   : > { %3299 = vst.msk [vmem:[%s5544_s15 + $0xb8] sm:$0xff] %vm480_vm1, %v3507_v48  ;;  %v3264_v59 = vpop.f32.mrb[31].mxu1 }
 0x5ce   : > { %3297 = vst.msk [vmem:[%s5544_s15 + $0xa8] sm:$0xff] %vm480_vm1, %v3264_v59 }
 0x5cf   : > { %3924 = shalt.err (!%p3921_p3)
}
 0x5d0   : > { %s3925_s22 = scalar_lea.hbm %s5597_s13, 3072  ;;  %s3929_s9 = scalar_lea.hbm %s5653_s7, 6144 }
 0x5d1   : > { %p3926_p4 = scmp.ne.s32.totalorder %s5597_s13, %s3925_s22  ;;  %p3930_p9 = scmp.lt.u32.totalorder %s5597_s13, %s5653_s7 }
 0x5d2   : > { %p3931_p10 = scmp.lt.u32.totalorder %s3929_s9, %s3925_s22  ;;  %p3933_p12 = scmp.lt.u32.totalorder %s3925_s22, %s5597_s13 }
 0x5d3   : > { %p3927_p7 = pnand %p3926_p4, %p4069_p5 }
 0x5d4   : > { %p3932_p11 = por %p3931_p10, %p3930_p9 }
 0x5d5   : > { %p3928_p8 = pneg %p3927_p7 }
 0x5d6   : > { %p3934_p13 = por %p3933_p12, %p3932_p11 }
 0x5d8   : > { %p3935_p0 = pnand %p3934_p13, %p3928_p8 }
 0x5da   : > { %3938 = shalt.err (!%p3935_p0)
}
 0x5db   : > { %s3989_s18 = smov 128   ;;  %s3990_s19 = smov 8  }
 0x5dc   : > { %3513 = dma.vmem_to_hbm [thread:$0]  (%p4069_p5), %s5590_s17, 3072, %s5597_s13, %s5605_s28, %s3989_s18, %s3989_s18, %s3990_s19  }
 0x5dd PF: > { %p3519_p1 = scmp.ge.s32.totalorder %s3973_s27, 2  ;;  %s3329_s29 = sand.u32 1, %s3961_s24  }
 0x5de   : > { %s3330_s14 = scalar_lea.sflag [#allocation3], %s3329_s29 }
 0x5df   : > { %p3516_p2 = pnand %p3519_p1, %p4073_p6 }
 0x5e1   : > { %3956 = dma.done.wait (!%p3516_p2), %s3330_s14, 3072  }
 0x5e2   : > { %3958 = vsyncadd (!%p3516_p2), %s3330_s14, 4294964224  ;;  %p17_p3 = scmp.ge.s32.totalorder %s4056_s30, 4   ;;  %s5730_s24 = smov %s3965_s25 }
 0x5e3   : > { %s5731_s25 = smov %s3969_s26  ;;  %s5732_s26 = smov %s4067_s10 }
 0x5e4   : > { %s5733_s27 = smov %s4056_s30  ;;  %19 = sbr.rel (!%p17_p3) target bundleno = 3 (0x3), region = 83 }
 0x5eb   :  { %3335 = vsyncpa [#allocation3], 1 }
 0x5ec   :  { %3337 = vsyncpa [#allocation3 + $0x1], 1 }

</bundles_post_ra>
